<compile_context>
chip_gen: v6e
topology: v6e:2x2x1
jax: 0.10.0
libtpu: 0.0.40
codegen_flags: <defaults>
</compile_context>

<pallas_src>
import functools

import jax
import jax.numpy as jnp
from jax.experimental import pallas as pl
from jax.experimental.pallas import tpu as pltpu

LEAKY_SLOPE = 0.2
BN_EPS = 1e-5
MAX_TM = 1024                   # cap on the lane tile of the flattened B*Ho*Wo dim
VREG_BUDGET_ELEMS = 32 * 1024   # keep the f32 y tile (+ y*y temp) inside the vreg file


def _round_up(x, m):
    return (x + m - 1) // m * m


def _pick_tm(m_pad, n_pad):
    """Largest multiple-of-128 divisor of m_pad that fits the TM/vreg caps."""
    cap = max(128, min(MAX_TM, (VREG_BUDGET_ELEMS // n_pad) // 128 * 128))
    blocks = m_pad // 128
    best = 1
    for d in range(1, blocks + 1):
        if blocks % d == 0 and d * 128 <= cap:
            best = d
    return best * 128


def _vmem_limit(*block_bytes):
    # Real footprint (double-buffered blocks) + generous headroom for Mosaic
    # internal scratch.  Always well under v7x's 64 MiB physical VMEM.
    return int(min(2 * sum(block_bytes) + (16 << 20), 48 << 20))


# ---------------------------------------------------------------------------
# Pallas kernels
# ---------------------------------------------------------------------------
def _conv_bias_kernel(w_ref, a_ref, b_ref, o_ref, *, leaky):
    # (N_pad, K_pad) @ (K_pad, TM) -> (N_pad, TM); bias + optional LeakyReLU.
    y = jnp.dot(w_ref[...], a_ref[...], preferred_element_type=jnp.float32)
    y = y + b_ref[...]                              # (N_pad, 1) lane-broadcast
    if leaky:
        y = jnp.where(y >= 0, y, LEAKY_SLOPE * y)
    o_ref[...] = y.astype(o_ref.dtype)


def _conv_stats_kernel(w_ref, a_ref, y_ref, sum_ref, ssq_ref):
    # Matmul + per-tile channel sum / sum-of-squares partials.  No carried
    # state across grid steps -> "parallel" semantics (megacore-shardable).
    y = jnp.dot(w_ref[...], a_ref[...], preferred_element_type=jnp.float32)
    sum_ref[...] = jnp.sum(y, axis=-1, keepdims=True)[None]     # (1, N_pad, 1)
    ssq_ref[...] = jnp.sum(y * y, axis=-1, keepdims=True)[None]
    y_ref[...] = y.astype(y_ref.dtype)                          # bf16 store


# ---------------------------------------------------------------------------
# pallas_call wrappers
# ---------------------------------------------------------------------------
def _matmul_cost(n, k, m, out_bytes):
    return pl.CostEstimate(flops=2 * n * k * m, transcendentals=0,
                           bytes_accessed=2 * (n * k + k * m) + out_bytes * n * m)


def _conv_bias_pallas(w, a, b, tm, *, leaky, out_dtype):
    n_pad, k_pad = w.shape
    _, m_pad = a.shape
    ob = jnp.dtype(out_dtype).itemsize
    kernel = functools.partial(_conv_bias_kernel, leaky=leaky)
    return pl.pallas_call(
        kernel,
        out_shape=jax.ShapeDtypeStruct((n_pad, m_pad), out_dtype),
        grid_spec=pl.GridSpec(
            grid=(m_pad // tm,),
            in_specs=[
                pl.BlockSpec((n_pad, k_pad), lambda m: (0, 0)),   # weight (resident)
                pl.BlockSpec((k_pad, tm), lambda m: (0, m)),      # patches (streamed)
                pl.BlockSpec((n_pad, 1), lambda m: (0, 0)),       # bias
            ],
            out_specs=pl.BlockSpec((n_pad, tm), lambda m: (0, m)),
        ),
        compiler_params=pltpu.CompilerParams(
            dimension_semantics=("parallel",),
            vmem_limit_bytes=_vmem_limit(n_pad * k_pad * 2, k_pad * tm * 2,
                                         n_pad * 4, n_pad * tm * ob)),
        cost_estimate=_matmul_cost(n_pad, k_pad, m_pad, ob),
    )(w, a, b)


def _conv_stats_pallas(w, a, tm):
    n_pad, k_pad = w.shape
    _, m_pad = a.shape
    nt = m_pad // tm
    return pl.pallas_call(
        _conv_stats_kernel,
        out_shape=(
            jax.ShapeDtypeStruct((n_pad, m_pad), jnp.bfloat16),   # raw conv out (bf16)
            jax.ShapeDtypeStruct((nt, n_pad, 1), jnp.float32),    # per-tile sum
            jax.ShapeDtypeStruct((nt, n_pad, 1), jnp.float32),    # per-tile sumsq
        ),
        grid_spec=pl.GridSpec(
            grid=(nt,),
            in_specs=[
                pl.BlockSpec((n_pad, k_pad), lambda m: (0, 0)),
                pl.BlockSpec((k_pad, tm), lambda m: (0, m)),
            ],
            out_specs=(
                pl.BlockSpec((n_pad, tm), lambda m: (0, m)),
                pl.BlockSpec((1, n_pad, 1), lambda m: (m, 0, 0)),
                pl.BlockSpec((1, n_pad, 1), lambda m: (m, 0, 0)),
            ),
        ),
        compiler_params=pltpu.CompilerParams(
            dimension_semantics=("parallel",),
            vmem_limit_bytes=_vmem_limit(n_pad * k_pad * 2, k_pad * tm * 2,
                                         n_pad * tm * 2, 2 * n_pad * 4)),
        cost_estimate=_matmul_cost(n_pad, k_pad, m_pad, 2),
    )(w, a)


# ---------------------------------------------------------------------------
# JAX glue: im2col (CBHW layout), padding, layer wrappers
# ---------------------------------------------------------------------------
def _im2col_cbhw(x, k, stride, pad):
    # x: (C, B, H, W) -> (C*k*k, B*Ho*Wo); row index = c*k*k + i*k + j
    C, B, H, W = x.shape
    xp = jnp.pad(x, ((0, 0), (0, 0), (pad, pad), (pad, pad)))
    Hp, Wp = H + 2 * pad, W + 2 * pad
    Ho = (Hp - k) // stride + 1
    Wo = (Wp - k) // stride + 1
    cols = []
    for i in range(k):
        for j in range(k):
            cols.append(xp[:, :, i:i + stride * Ho:stride,
                              j:j + stride * Wo:stride])
    a = jnp.stack(cols, axis=1)                     # (C, k*k, B, Ho, Wo)
    return a.reshape(C * k * k, B * Ho * Wo), Ho, Wo


def _dims(x, weight, stride, pad):
    _, B, H, W = x.shape
    out_c, in_c, k, _ = weight.shape
    Ho = (H + 2 * pad - k) // stride + 1
    Wo = (W + 2 * pad - k) // stride + 1
    K = in_c * k * k
    M = B * Ho * Wo
    n_pad = _round_up(out_c, 16)                    # bf16-friendly sublane packing
    k_pad = _round_up(K, 128)
    m_pad = _round_up(M, 128)
    tm = _pick_tm(m_pad, n_pad)                     # divisor of m_pad: no tile waste
    return out_c, k, Ho, Wo, K, M, n_pad, k_pad, m_pad, tm


def _prep_a(x, k, stride, pad, k_pad, m_pad, scale=None, shift=None):
    # Optionally fold the previous layer's BatchNorm affine + LeakyReLU here
    # (must happen BEFORE the conv's spatial zero-padding).
    if scale is not None:
        xf = (x.astype(jnp.float32) * scale[:, None, None, None]
              + shift[:, None, None, None])
        x = jnp.where(xf >= 0, xf, LEAKY_SLOPE * xf)
    x = x.astype(jnp.bfloat16)
    a, _, _ = _im2col_cbhw(x, k, stride, pad)
    K, M = a.shape
    return jnp.pad(a, ((0, k_pad - K), (0, m_pad - M)))


def _prep_weight(weight, n_pad, k_pad):
    out_c, in_c, k, _ = weight.shape
    wm = weight.reshape(out_c, in_c * k * k)
    wm = jnp.pad(wm, ((0, n_pad - out_c), (0, k_pad - in_c * k * k)))
    return wm.astype(jnp.bfloat16)


def _pad_col(v, n_pad):
    return jnp.pad(v, (0, n_pad - v.shape[0])).astype(jnp.float32).reshape(n_pad, 1)


def _conv_bias_layer(x, weight, bias, *, stride, pad, leaky, out_dtype,
                     prev_scale=None, prev_shift=None):
    out_c, k, Ho, Wo, K, M, n_pad, k_pad, m_pad, tm = _dims(x, weight, stride, pad)
    B = x.shape[1]
    a = _prep_a(x, k, stride, pad, k_pad, m_pad, prev_scale, prev_shift)
    wm = _prep_weight(weight, n_pad, k_pad)
    b = _pad_col(bias, n_pad)
    y = _conv_bias_pallas(wm, a, b, tm, leaky=leaky, out_dtype=out_dtype)
    return y[:out_c, :M].reshape(out_c, B, Ho, Wo)


def _conv_bn_layer(x, weight, gamma, beta, *, stride, pad,
                   prev_scale=None, prev_shift=None):
    out_c, k, Ho, Wo, K, M, n_pad, k_pad, m_pad, tm = _dims(x, weight, stride, pad)
    B = x.shape[1]
    a = _prep_a(x, k, stride, pad, k_pad, m_pad, prev_scale, prev_shift)
    wm = _prep_weight(weight, n_pad, k_pad)

    # Pass 1: matmul + per-tile channel statistics ("parallel" grid).
    y, psum, pssq = _conv_stats_pallas(wm, a, tm)

    # Tiny cross-tile reduction in XLA.  Padded M columns are all-zero and
    # contribute nothing to sum / sumsq (no bias added in pass 1), so dividing
    # by the true M yields exact whole-batch statistics.
    ysum = jnp.sum(psum, axis=0)[:out_c, 0]
    yssq = jnp.sum(pssq, axis=0)[:out_c, 0]
    mean = ysum / M
    var = yssq / M - mean * mean               # single-pass E[y^2] - mean^2
    inv = jax.lax.rsqrt(var + BN_EPS)
    scale = (gamma * inv).astype(jnp.float32)
    shift = (beta - mean * gamma * inv).astype(jnp.float32)

    # The affine + LeakyReLU is applied by the NEXT layer's _prep_a.
    y = y[:out_c, :M].reshape(out_c, B, Ho, Wo)
    return y, scale, shift


# ---------------------------------------------------------------------------
# PatchGANDiscriminator forward
# ---------------------------------------------------------------------------
def init_params(key, in_channels=3, features=8):
    ks = jax.random.split(key, 16)
    f = features
    chans = [(in_channels * 2, f), (f, 2 * f), (2 * f, 4 * f), (4 * f, 8 * f),
             (8 * f, 1)]
    params = {}
    for idx, (ci, co) in enumerate(chans):
        params[f"w{idx}"] = 0.05 * jax.random.normal(
            ks[idx], (co, ci, 4, 4), jnp.float32)
    params["b0"] = 0.05 * jax.random.normal(ks[5], (f,), jnp.float32)
    params["b4"] = 0.05 * jax.random.normal(ks[6], (1,), jnp.float32)
    for i, co in zip((1, 2, 3), (2 * f, 4 * f, 8 * f)):
        params[f"g{i}"] = 1.0 + 0.05 * jax.random.normal(
            ks[6 + i], (co,), jnp.float32)
        params[f"beta{i}"] = 0.05 * jax.random.normal(
            ks[9 + i], (co,), jnp.float32)
    return params


def patchgan_forward(params, input_image, target_image):
    x = jnp.concatenate([input_image, target_image], axis=1)   # NCHW
    x = jnp.transpose(x, (1, 0, 2, 3))                          # -> (C, B, H, W)

    # initial: Conv(k4,s2,p1, bias) + LeakyReLU (fused into the matmul kernel)
    x = _conv_bias_layer(x, params["w0"], params["b0"], stride=2, pad=1,
                         leaky=True, out_dtype=jnp.bfloat16)

    # blocks 1..3: Conv(no bias) + BatchNorm(training batch stats) + LeakyReLU.
    # Block i's BN affine + LeakyReLU is folded into block i+1's input prep.
    scale = shift = None
    for i in (1, 2, 3):
        x, scale, shift = _conv_bn_layer(x, params[f"w{i}"], params[f"g{i}"],
                                         params[f"beta{i}"], stride=2, pad=1,
                                         prev_scale=scale, prev_shift=shift)

    # final: Conv(k4,s1,p1, bias), no activation; folds block3's BN+LeakyReLU.
    x = _conv_bias_layer(x, params["w4"], params["b4"], stride=1, pad=1,
                         leaky=False, out_dtype=jnp.float32,
                         prev_scale=scale, prev_shift=shift)
    return jnp.transpose(x, (1, 0, 2, 3))                       # -> NCHW


# ---------------------------------------------------------------------------
# Pure-JAX f32 reference (correctness check only)
# ---------------------------------------------------------------------------
def _ref_forward(params, inp, tgt):
    def conv(x, w, stride):
        return jax.lax.conv_general_dilated(
            x, w, (stride, stride), [(1, 1), (1, 1)],
            dimension_numbers=("NCHW", "OIHW", "NCHW"))

    def leaky(x):
        return jnp.where(x >= 0, x, LEAKY_SLOPE * x)

    x = jnp.concatenate([inp, tgt], axis=1)
    x = leaky(conv(x, params["w0"], 2) + params["b0"][None, :, None, None])
    for i in (1, 2, 3):
        x = conv(x, params[f"w{i}"], 2)
        mean = x.mean(axis=(0, 2, 3), keepdims=True)
        var = jnp.square(x - mean).mean(axis=(0, 2, 3), keepdims=True)
        x = (x - mean) * jax.lax.rsqrt(var + BN_EPS)
        x = x * params[f"g{i}"][None, :, None, None] \
            + params[f"beta{i}"][None, :, None, None]
        x = leaky(x)
    x = conv(x, params["w4"], 1) + params["b4"][None, :, None, None]
    return x


if __name__ == "__main__":
    key = jax.random.PRNGKey(0)
    k_in, k_tgt, k_par = jax.random.split(key, 3)

    # Small, but large enough that both the bias-conv (layer 0: 6 tiles) and
    # the BN-stats (layer 1: 3 tiles) kernels run multi-tile grids.
    B, C, H, W = 2, 3, 96, 96
    input_image = jax.random.normal(k_in, (B, C, H, W), jnp.float32)
    target_image = jax.random.normal(k_tgt, (B, C, H, W), jnp.float32)
    params = init_params(k_par, in_channels=C, features=8)

    fwd = jax.jit(patchgan_forward)
    out = jax.block_until_ready(fwd(params, input_image, target_image))

    ref = jax.block_until_ready(_ref_forward(params, input_image, target_image))
    assert out.shape == ref.shape == (B, 1, 5, 5), (out.shape, ref.shape)
    max_err = float(jnp.max(jnp.abs(out - ref)))
    # bf16 MXU inputs / bf16 inter-layer activations -> loose tolerance
    # (accumulation and BN statistics stay in f32).
    assert jnp.allclose(out, ref, atol=5e-2, rtol=5e-2), max_err

    print("KERNEL_OK")
</pallas_src>

<mosaic_0001>
module attributes {stable_mosaic.version = 11 : i64} {
  func.func @_conv_bias_kernel(%arg0: i32, %arg1: memref<16x128xbf16, #tpu.memory_space<vmem>>, %arg2: memref<128x768xbf16, #tpu.memory_space<vmem>>, %arg3: memref<16x1xf32, #tpu.memory_space<vmem>>, %arg4: memref<16x768xbf16, #tpu.memory_space<vmem>>) attributes {dimension_semantics = [#tpu.dimension_semantics<parallel>], iteration_bounds = array<i64: 6>, scalar_prefetch = 0 : i64, scratch_operands = 0 : i64, tpu.core_type = #tpu.core_type<tc>, window_params = [{pipeline_mode = #tpu.pipeline_mode<synchronous>, transform_indices = @transform_0, window_bounds = array<i64: 16, 128>}, {transform_indices = @transform_1, window_bounds = array<i64: 128, 768>}, {pipeline_mode = #tpu.pipeline_mode<synchronous>, transform_indices = @transform_2, window_bounds = array<i64: 16, 1>}, {transform_indices = @transform_3, window_bounds = array<i64: 16, 768>}]} {
    %c0 = arith.constant 0 : index
    %c0_0 = arith.constant 0 : index
    %0 = vector.load %arg1[%c0, %c0_0] : memref<16x128xbf16, #tpu.memory_space<vmem>>, vector<16x128xbf16>
    %c0_1 = arith.constant 0 : index
    %c0_2 = arith.constant 0 : index
    %1 = vector.load %arg2[%c0_1, %c0_2] : memref<128x768xbf16, #tpu.memory_space<vmem>>, vector<128x768xbf16>
    %cst = arith.constant dense<0.000000e+00> : vector<16x768xf32>
    %2 = tpu.matmul %0, %1, %cst {dimension_numbers = #tpu.dot_dimension_numbers<[1], [0], [0], [1], [0, 0, 1, 1], [], []>} : vector<16x128xbf16>, vector<128x768xbf16>, vector<16x768xf32> -> vector<16x768xf32>
    %c0_3 = arith.constant 0 : index
    %c0_4 = arith.constant 0 : index
    %3 = vector.load %arg3[%c0_3, %c0_4] : memref<16x1xf32, #tpu.memory_space<vmem>>, vector<16x1xf32>
    %4 = vector.broadcast %3 : vector<16x1xf32> to vector<16x768xf32>
    %5 = arith.addf %2, %4 : vector<16x768xf32>
    %cst_5 = arith.constant 0.000000e+00 : f32
    %6 = vector.broadcast %cst_5 : f32 to vector<16x768xf32>
    %7 = arith.cmpf oge, %5, %6 : vector<16x768xf32>
    %cst_6 = arith.constant 2.000000e-01 : f32
    %8 = vector.broadcast %cst_6 : f32 to vector<16x768xf32>
    %9 = arith.mulf %8, %5 : vector<16x768xf32>
    %10 = arith.select %7, %5, %9 : vector<16x768xi1>, vector<16x768xf32>
    %11 = arith.truncf %10 : vector<16x768xf32> to vector<16x768xbf16>
    %c0_7 = arith.constant 0 : index
    %c0_8 = arith.constant 0 : index
    %12 = vector.load %arg4[%c0_7, %c0_8] : memref<16x768xbf16, #tpu.memory_space<vmem>>, vector<16x768xbf16>
    tpu.vector_store %arg4[%c0_7, %c0_8], %11 {strides = array<i32>} : memref<16x768xbf16, #tpu.memory_space<vmem>>, vector<16x768xbf16>,
    return
  }
  func.func @transform_0(%arg0: i32) -> (i32, i32) {
    %c0_i32 = arith.constant 0 : i32
    %c0_i32_0 = arith.constant 0 : i32
    %c0_i32_1 = arith.constant 0 : i32
    return %c0_i32, %c0_i32_0 : i32, i32
  }
  func.func @transform_1(%arg0: i32) -> (i32, i32) {
    %c0_i32 = arith.constant 0 : i32
    %c0_i32_0 = arith.constant 0 : i32
    return %c0_i32, %arg0 : i32, i32
  }
  func.func @transform_2(%arg0: i32) -> (i32, i32) {
    %c0_i32 = arith.constant 0 : i32
    %c0_i32_0 = arith.constant 0 : i32
    %c0_i32_1 = arith.constant 0 : i32
    return %c0_i32, %c0_i32_0 : i32, i32
  }
  func.func @transform_3(%arg0: i32) -> (i32, i32) {
    %c0_i32 = arith.constant 0 : i32
    %c0_i32_0 = arith.constant 0 : i32
    return %c0_i32, %arg0 : i32, i32
  }
}

module attributes {stable_mosaic.version = 11 : i64} {
  func.func @_conv_stats_kernel(%arg0: i32, %arg1: memref<16x128xbf16, #tpu.memory_space<vmem>>, %arg2: memref<128x384xbf16, #tpu.memory_space<vmem>>, %arg3: memref<16x384xbf16, #tpu.memory_space<vmem>>, %arg4: memref<1x16x1xf32, #tpu.memory_space<vmem>>, %arg5: memref<1x16x1xf32, #tpu.memory_space<vmem>>) attributes {dimension_semantics = [#tpu.dimension_semantics<parallel>], iteration_bounds = array<i64: 3>, scalar_prefetch = 0 : i64, scratch_operands = 0 : i64, tpu.core_type = #tpu.core_type<tc>, window_params = [{pipeline_mode = #tpu.pipeline_mode<synchronous>, transform_indices = @transform_0, window_bounds = array<i64: 16, 128>}, {transform_indices = @transform_1, window_bounds = array<i64: 128, 384>}, {transform_indices = @transform_2, window_bounds = array<i64: 16, 384>}, {transform_indices = @transform_3, window_bounds = array<i64: 1, 16, 1>}, {transform_indices = @transform_4, window_bounds = array<i64: 1, 16, 1>}]} {
    %c0 = arith.constant 0 : index
    %c0_0 = arith.constant 0 : index
    %0 = vector.load %arg1[%c0, %c0_0] : memref<16x128xbf16, #tpu.memory_space<vmem>>, vector<16x128xbf16>
    %c0_1 = arith.constant 0 : index
    %c0_2 = arith.constant 0 : index
    %1 = vector.load %arg2[%c0_1, %c0_2] : memref<128x384xbf16, #tpu.memory_space<vmem>>, vector<128x384xbf16>
    %cst = arith.constant dense<0.000000e+00> : vector<16x384xf32>
    %2 = tpu.matmul %0, %1, %cst {dimension_numbers = #tpu.dot_dimension_numbers<[1], [0], [0], [1], [0, 0, 1, 1], [], []>} : vector<16x128xbf16>, vector<128x384xbf16>, vector<16x384xf32> -> vector<16x384xf32>
    %cst_3 = arith.constant dense<0.000000e+00> : vector<16xf32>
    %3 = vector.multi_reduction <add>, %2, %cst_3 [1] : vector<16x384xf32> to vector<16xf32>
    %4 = vector.shape_cast %3 : vector<16xf32> to vector<16x1xf32>
    %5 = vector.shape_cast %4 : vector<16x1xf32> to vector<1x16x1xf32>
    %c0_4 = arith.constant 0 : index
    %c0_5 = arith.constant 0 : index
    %c0_6 = arith.constant 0 : index
    %6 = vector.load %arg4[%c0_4, %c0_5, %c0_6] : memref<1x16x1xf32, #tpu.memory_space<vmem>>, vector<1x16x1xf32>
    tpu.vector_store %arg4[%c0_4, %c0_5, %c0_6], %5 {strides = array<i32>} : memref<1x16x1xf32, #tpu.memory_space<vmem>>, vector<1x16x1xf32>,
    %7 = arith.mulf %2, %2 : vector<16x384xf32>
    %cst_7 = arith.constant dense<0.000000e+00> : vector<16xf32>
    %8 = vector.multi_reduction <add>, %7, %cst_7 [1] : vector<16x384xf32> to vector<16xf32>
    %9 = vector.shape_cast %8 : vector<16xf32> to vector<16x1xf32>
    %10 = vector.shape_cast %9 : vector<16x1xf32> to vector<1x16x1xf32>
    %c0_8 = arith.constant 0 : index
    %c0_9 = arith.constant 0 : index
    %c0_10 = arith.constant 0 : index
    %11 = vector.load %arg5[%c0_8, %c0_9, %c0_10] : memref<1x16x1xf32, #tpu.memory_space<vmem>>, vector<1x16x1xf32>
    tpu.vector_store %arg5[%c0_8, %c0_9, %c0_10], %10 {strides = array<i32>} : memref<1x16x1xf32, #tpu.memory_space<vmem>>, vector<1x16x1xf32>,
    %12 = arith.truncf %2 : vector<16x384xf32> to vector<16x384xbf16>
    %c0_11 = arith.constant 0 : index
    %c0_12 = arith.constant 0 : index
    %13 = vector.load %arg3[%c0_11, %c0_12] : memref<16x384xbf16, #tpu.memory_space<vmem>>, vector<16x384xbf16>
    tpu.vector_store %arg3[%c0_11, %c0_12], %12 {strides = array<i32>} : memref<16x384xbf16, #tpu.memory_space<vmem>>, vector<16x384xbf16>,
    return
  }
  func.func @transform_0(%arg0: i32) -> (i32, i32) {
    %c0_i32 = arith.constant 0 : i32
    %c0_i32_0 = arith.constant 0 : i32
    %c0_i32_1 = arith.constant 0 : i32
    return %c0_i32, %c0_i32_0 : i32, i32
  }
  func.func @transform_1(%arg0: i32) -> (i32, i32) {
    %c0_i32 = arith.constant 0 : i32
    %c0_i32_0 = arith.constant 0 : i32
    return %c0_i32, %arg0 : i32, i32
  }
  func.func @transform_2(%arg0: i32) -> (i32, i32) {
    %c0_i32 = arith.constant 0 : i32
    %c0_i32_0 = arith.constant 0 : i32
    return %c0_i32, %arg0 : i32, i32
  }
  func.func @transform_3(%arg0: i32) -> (i32, i32, i32) {
    %c0_i32 = arith.constant 0 : i32
    %c0_i32_0 = arith.constant 0 : i32
    %c0_i32_1 = arith.constant 0 : i32
    return %arg0, %c0_i32, %c0_i32_0 : i32, i32, i32
  }
  func.func @transform_4(%arg0: i32) -> (i32, i32, i32) {
    %c0_i32 = arith.constant 0 : i32
    %c0_i32_0 = arith.constant 0 : i32
    %c0_i32_1 = arith.constant 0 : i32
    return %arg0, %c0_i32, %c0_i32_0 : i32, i32, i32
  }
}

module attributes {stable_mosaic.version = 11 : i64} {
  func.func @_conv_stats_kernel(%arg0: i32, %arg1: memref<32x256xbf16, #tpu.memory_space<vmem>>, %arg2: memref<256x384xbf16, #tpu.memory_space<vmem>>, %arg3: memref<32x384xbf16, #tpu.memory_space<vmem>>, %arg4: memref<1x32x1xf32, #tpu.memory_space<vmem>>, %arg5: memref<1x32x1xf32, #tpu.memory_space<vmem>>) attributes {dimension_semantics = [#tpu.dimension_semantics<parallel>], iteration_bounds = array<i64: 1>, scalar_prefetch = 0 : i64, scratch_operands = 0 : i64, tpu.core_type = #tpu.core_type<tc>, window_params = [{pipeline_mode = #tpu.pipeline_mode<synchronous>, transform_indices = @transform_0, window_bounds = array<i64: 32, 256>}, {transform_indices = @transform_1, window_bounds = array<i64: 256, 384>}, {transform_indices = @transform_2, window_bounds = array<i64: 32, 384>}, {transform_indices = @transform_3, window_bounds = array<i64: 1, 32, 1>}, {transform_indices = @transform_4, window_bounds = array<i64: 1, 32, 1>}]} {
    %c0 = arith.constant 0 : index
    %c0_0 = arith.constant 0 : index
    %0 = vector.load %arg1[%c0, %c0_0] : memref<32x256xbf16, #tpu.memory_space<vmem>>, vector<32x256xbf16>
    %c0_1 = arith.constant 0 : index
    %c0_2 = arith.constant 0 : index
    %1 = vector.load %arg2[%c0_1, %c0_2] : memref<256x384xbf16, #tpu.memory_space<vmem>>, vector<256x384xbf16>
    %cst = arith.constant dense<0.000000e+00> : vector<32x384xf32>
    %2 = tpu.matmul %0, %1, %cst {dimension_numbers = #tpu.dot_dimension_numbers<[1], [0], [0], [1], [0, 0, 1, 1], [], []>} : vector<32x256xbf16>, vector<256x384xbf16>, vector<32x384xf32> -> vector<32x384xf32>
    %cst_3 = arith.constant dense<0.000000e+00> : vector<32xf32>
    %3 = vector.multi_reduction <add>, %2, %cst_3 [1] : vector<32x384xf32> to vector<32xf32>
    %4 = vector.shape_cast %3 : vector<32xf32> to vector<32x1xf32>
    %5 = vector.shape_cast %4 : vector<32x1xf32> to vector<1x32x1xf32>
    %c0_4 = arith.constant 0 : index
    %c0_5 = arith.constant 0 : index
    %c0_6 = arith.constant 0 : index
    %6 = vector.load %arg4[%c0_4, %c0_5, %c0_6] : memref<1x32x1xf32, #tpu.memory_space<vmem>>, vector<1x32x1xf32>
    tpu.vector_store %arg4[%c0_4, %c0_5, %c0_6], %5 {strides = array<i32>} : memref<1x32x1xf32, #tpu.memory_space<vmem>>, vector<1x32x1xf32>,
    %7 = arith.mulf %2, %2 : vector<32x384xf32>
    %cst_7 = arith.constant dense<0.000000e+00> : vector<32xf32>
    %8 = vector.multi_reduction <add>, %7, %cst_7 [1] : vector<32x384xf32> to vector<32xf32>
    %9 = vector.shape_cast %8 : vector<32xf32> to vector<32x1xf32>
    %10 = vector.shape_cast %9 : vector<32x1xf32> to vector<1x32x1xf32>
    %c0_8 = arith.constant 0 : index
    %c0_9 = arith.constant 0 : index
    %c0_10 = arith.constant 0 : index
    %11 = vector.load %arg5[%c0_8, %c0_9, %c0_10] : memref<1x32x1xf32, #tpu.memory_space<vmem>>, vector<1x32x1xf32>
    tpu.vector_store %arg5[%c0_8, %c0_9, %c0_10], %10 {strides = array<i32>} : memref<1x32x1xf32, #tpu.memory_space<vmem>>, vector<1x32x1xf32>,
    %12 = arith.truncf %2 : vector<32x384xf32> to vector<32x384xbf16>
    %c0_11 = arith.constant 0 : index
    %c0_12 = arith.constant 0 : index
    %13 = vector.load %arg3[%c0_11, %c0_12] : memref<32x384xbf16, #tpu.memory_space<vmem>>, vector<32x384xbf16>
    tpu.vector_store %arg3[%c0_11, %c0_12], %12 {strides = array<i32>} : memref<32x384xbf16, #tpu.memory_space<vmem>>, vector<32x384xbf16>,
    return
  }
  func.func @transform_0(%arg0: i32) -> (i32, i32) {
    %c0_i32 = arith.constant 0 : i32
    %c0_i32_0 = arith.constant 0 : i32
    %c0_i32_1 = arith.constant 0 : i32
    return %c0_i32, %c0_i32_0 : i32, i32
  }
  func.func @transform_1(%arg0: i32) -> (i32, i32) {
    %c0_i32 = arith.constant 0 : i32
    %c0_i32_0 = arith.constant 0 : i32
    return %c0_i32, %arg0 : i32, i32
  }
  func.func @transform_2(%arg0: i32) -> (i32, i32) {
    %c0_i32 = arith.constant 0 : i32
    %c0_i32_0 = arith.constant 0 : i32
    return %c0_i32, %arg0 : i32, i32
  }
  func.func @transform_3(%arg0: i32) -> (i32, i32, i32) {
    %c0_i32 = arith.constant 0 : i32
    %c0_i32_0 = arith.constant 0 : i32
    %c0_i32_1 = arith.constant 0 : i32
    return %arg0, %c0_i32, %c0_i32_0 : i32, i32, i32
  }
  func.func @transform_4(%arg0: i32) -> (i32, i32, i32) {
    %c0_i32 = arith.constant 0 : i32
    %c0_i32_0 = arith.constant 0 : i32
    %c0_i32_1 = arith.constant 0 : i32
    return %arg0, %c0_i32, %c0_i32_0 : i32, i32, i32
  }
}

module attributes {stable_mosaic.version = 11 : i64} {
  func.func @_conv_stats_kernel(%arg0: i32, %arg1: memref<64x512xbf16, #tpu.memory_space<vmem>>, %arg2: memref<512x128xbf16, #tpu.memory_space<vmem>>, %arg3: memref<64x128xbf16, #tpu.memory_space<vmem>>, %arg4: memref<1x64x1xf32, #tpu.memory_space<vmem>>, %arg5: memref<1x64x1xf32, #tpu.memory_space<vmem>>) attributes {dimension_semantics = [#tpu.dimension_semantics<parallel>], iteration_bounds = array<i64: 1>, scalar_prefetch = 0 : i64, scratch_operands = 0 : i64, tpu.core_type = #tpu.core_type<tc>, window_params = [{pipeline_mode = #tpu.pipeline_mode<synchronous>, transform_indices = @transform_0, window_bounds = array<i64: 64, 512>}, {transform_indices = @transform_1, window_bounds = array<i64: 512, 128>}, {transform_indices = @transform_2, window_bounds = array<i64: 64, 128>}, {transform_indices = @transform_3, window_bounds = array<i64: 1, 64, 1>}, {transform_indices = @transform_4, window_bounds = array<i64: 1, 64, 1>}]} {
    %c0 = arith.constant 0 : index
    %c0_0 = arith.constant 0 : index
    %0 = vector.load %arg1[%c0, %c0_0] : memref<64x512xbf16, #tpu.memory_space<vmem>>, vector<64x512xbf16>
    %c0_1 = arith.constant 0 : index
    %c0_2 = arith.constant 0 : index
    %1 = vector.load %arg2[%c0_1, %c0_2] : memref<512x128xbf16, #tpu.memory_space<vmem>>, vector<512x128xbf16>
    %cst = arith.constant dense<0.000000e+00> : vector<64x128xf32>
    %2 = tpu.matmul %0, %1, %cst {dimension_numbers = #tpu.dot_dimension_numbers<[1], [0], [0], [1], [0, 0, 1, 1], [], []>} : vector<64x512xbf16>, vector<512x128xbf16>, vector<64x128xf32> -> vector<64x128xf32>
    %cst_3 = arith.constant dense<0.000000e+00> : vector<64xf32>
    %3 = vector.multi_reduction <add>, %2, %cst_3 [1] : vector<64x128xf32> to vector<64xf32>
    %4 = vector.shape_cast %3 : vector<64xf32> to vector<64x1xf32>
    %5 = vector.shape_cast %4 : vector<64x1xf32> to vector<1x64x1xf32>
    %c0_4 = arith.constant 0 : index
    %c0_5 = arith.constant 0 : index
    %c0_6 = arith.constant 0 : index
    %6 = vector.load %arg4[%c0_4, %c0_5, %c0_6] : memref<1x64x1xf32, #tpu.memory_space<vmem>>, vector<1x64x1xf32>
    tpu.vector_store %arg4[%c0_4, %c0_5, %c0_6], %5 {strides = array<i32>} : memref<1x64x1xf32, #tpu.memory_space<vmem>>, vector<1x64x1xf32>,
    %7 = arith.mulf %2, %2 : vector<64x128xf32>
    %cst_7 = arith.constant dense<0.000000e+00> : vector<64xf32>
    %8 = vector.multi_reduction <add>, %7, %cst_7 [1] : vector<64x128xf32> to vector<64xf32>
    %9 = vector.shape_cast %8 : vector<64xf32> to vector<64x1xf32>
    %10 = vector.shape_cast %9 : vector<64x1xf32> to vector<1x64x1xf32>
    %c0_8 = arith.constant 0 : index
    %c0_9 = arith.constant 0 : index
    %c0_10 = arith.constant 0 : index
    %11 = vector.load %arg5[%c0_8, %c0_9, %c0_10] : memref<1x64x1xf32, #tpu.memory_space<vmem>>, vector<1x64x1xf32>
    tpu.vector_store %arg5[%c0_8, %c0_9, %c0_10], %10 {strides = array<i32>} : memref<1x64x1xf32, #tpu.memory_space<vmem>>, vector<1x64x1xf32>,
    %12 = arith.truncf %2 : vector<64x128xf32> to vector<64x128xbf16>
    %c0_11 = arith.constant 0 : index
    %c0_12 = arith.constant 0 : index
    %13 = vector.load %arg3[%c0_11, %c0_12] : memref<64x128xbf16, #tpu.memory_space<vmem>>, vector<64x128xbf16>
    tpu.vector_store %arg3[%c0_11, %c0_12], %12 {strides = array<i32>} : memref<64x128xbf16, #tpu.memory_space<vmem>>, vector<64x128xbf16>,
    return
  }
  func.func @transform_0(%arg0: i32) -> (i32, i32) {
    %c0_i32 = arith.constant 0 : i32
    %c0_i32_0 = arith.constant 0 : i32
    %c0_i32_1 = arith.constant 0 : i32
    return %c0_i32, %c0_i32_0 : i32, i32
  }
  func.func @transform_1(%arg0: i32) -> (i32, i32) {
    %c0_i32 = arith.constant 0 : i32
    %c0_i32_0 = arith.constant 0 : i32
    return %c0_i32, %arg0 : i32, i32
  }
  func.func @transform_2(%arg0: i32) -> (i32, i32) {
    %c0_i32 = arith.constant 0 : i32
    %c0_i32_0 = arith.constant 0 : i32
    return %c0_i32, %arg0 : i32, i32
  }
  func.func @transform_3(%arg0: i32) -> (i32, i32, i32) {
    %c0_i32 = arith.constant 0 : i32
    %c0_i32_0 = arith.constant 0 : i32
    %c0_i32_1 = arith.constant 0 : i32
    return %arg0, %c0_i32, %c0_i32_0 : i32, i32, i32
  }
  func.func @transform_4(%arg0: i32) -> (i32, i32, i32) {
    %c0_i32 = arith.constant 0 : i32
    %c0_i32_0 = arith.constant 0 : i32
    %c0_i32_1 = arith.constant 0 : i32
    return %arg0, %c0_i32, %c0_i32_0 : i32, i32, i32
  }
}

module attributes {stable_mosaic.version = 11 : i64} {
  func.func @_conv_bias_kernel(%arg0: i32, %arg1: memref<16x1024xbf16, #tpu.memory_space<vmem>>, %arg2: memref<1024x128xbf16, #tpu.memory_space<vmem>>, %arg3: memref<16x1xf32, #tpu.memory_space<vmem>>, %arg4: memref<16x128xf32, #tpu.memory_space<vmem>>) attributes {dimension_semantics = [#tpu.dimension_semantics<parallel>], iteration_bounds = array<i64: 1>, scalar_prefetch = 0 : i64, scratch_operands = 0 : i64, tpu.core_type = #tpu.core_type<tc>, window_params = [{pipeline_mode = #tpu.pipeline_mode<synchronous>, transform_indices = @transform_0, window_bounds = array<i64: 16, 1024>}, {transform_indices = @transform_1, window_bounds = array<i64: 1024, 128>}, {pipeline_mode = #tpu.pipeline_mode<synchronous>, transform_indices = @transform_2, window_bounds = array<i64: 16, 1>}, {transform_indices = @transform_3, window_bounds = array<i64: 16, 128>}]} {
    %c0 = arith.constant 0 : index
    %c0_0 = arith.constant 0 : index
    %0 = vector.load %arg1[%c0, %c0_0] : memref<16x1024xbf16, #tpu.memory_space<vmem>>, vector<16x1024xbf16>
    %c0_1 = arith.constant 0 : index
    %c0_2 = arith.constant 0 : index
    %1 = vector.load %arg2[%c0_1, %c0_2] : memref<1024x128xbf16, #tpu.memory_space<vmem>>, vector<1024x128xbf16>
    %cst = arith.constant dense<0.000000e+00> : vector<16x128xf32>
    %2 = tpu.matmul %0, %1, %cst {dimension_numbers = #tpu.dot_dimension_numbers<[1], [0], [0], [1], [0, 0, 1, 1], [], []>} : vector<16x1024xbf16>, vector<1024x128xbf16>, vector<16x128xf32> -> vector<16x128xf32>
    %c0_3 = arith.constant 0 : index
    %c0_4 = arith.constant 0 : index
    %3 = vector.load %arg3[%c0_3, %c0_4] : memref<16x1xf32, #tpu.memory_space<vmem>>, vector<16x1xf32>
    %4 = vector.broadcast %3 : vector<16x1xf32> to vector<16x128xf32>
    %5 = arith.addf %2, %4 : vector<16x128xf32>
    %c0_5 = arith.constant 0 : index
    %c0_6 = arith.constant 0 : index
    %6 = vector.load %arg4[%c0_5, %c0_6] : memref<16x128xf32, #tpu.memory_space<vmem>>, vector<16x128xf32>
    tpu.vector_store %arg4[%c0_5, %c0_6], %5 {strides = array<i32>} : memref<16x128xf32, #tpu.memory_space<vmem>>, vector<16x128xf32>,
    return
  }
  func.func @transform_0(%arg0: i32) -> (i32, i32) {
    %c0_i32 = arith.constant 0 : i32
    %c0_i32_0 = arith.constant 0 : i32
    %c0_i32_1 = arith.constant 0 : i32
    return %c0_i32, %c0_i32_0 : i32, i32
  }
  func.func @transform_1(%arg0: i32) -> (i32, i32) {
    %c0_i32 = arith.constant 0 : i32
    %c0_i32_0 = arith.constant 0 : i32
    return %c0_i32, %arg0 : i32, i32
  }
  func.func @transform_2(%arg0: i32) -> (i32, i32) {
    %c0_i32 = arith.constant 0 : i32
    %c0_i32_0 = arith.constant 0 : i32
    %c0_i32_1 = arith.constant 0 : i32
    return %c0_i32, %c0_i32_0 : i32, i32
  }
  func.func @transform_3(%arg0: i32) -> (i32, i32) {
    %c0_i32 = arith.constant 0 : i32
    %c0_i32_0 = arith.constant 0 : i32
    return %c0_i32, %arg0 : i32, i32
  }
}

</mosaic_0001>

<bundles_post_ra>
// kernel: patchgan_forward.5
= control target key start
LH: loop header
LB: loop body
LE: loop exit
PB: predicated region body
PF: predicated region fallthrough
CT: control target
= control target key end

     0   :  { %s1109_s12 = smov 0   ;;  %s1111_s13 = smov 0   ;;  %s1350_s0 = inlined_call_operand.vmem [shape: bf16[16,128], index: 0, kind: input, shape index: {}]   ;;  %s1351_s1 = inlined_call_operand.vmem [shape: bf16[128,4608], index: 1, kind: input, shape index: {}]   ;;  %s1352_s2 = inlined_call_operand.vmem [shape: f32[16,1], index: 2, kind: input, shape index: {}]   ;;  %s1353_s3 = inlined_call_operand.vmem [shape: bf16[16,4608], index: 3, kind: output, shape index: {}]  }
   0x1   :  { %s1113_s14 = smov 0  }
   0x2 LB: > { %s890_s15 = sadd.s32 4294967295, %s1086_s14   ;;  %s1126_s16 = sadd.s32 1, %s1086_s14   ;;  %s1086_s14 = sphi %s1113_s14, %s1357_s14   ;;  %s1082_s13 = sphi %s1111_s13, %s1356_s13   ;;  %s1078_s12 = sphi %s1109_s12, %s1355_s12  }
   0x3   : > { %s38_s17 = ssub.s32 %s1086_s14, %s1126_s16  ;;  %s41_s18 = sadd.s32 1, %s1082_s13 }
   0x4   : > { %p39_p0 = scmp.eq.s32.totalorder %s38_s17, 0  ;;  %p48_p1 = scmp.ne.s32.totalorder %s1082_s13, %s1078_s12 }
   0x5   : > { %p49_p2 = scmp.eq.s32.totalorder %s1086_s14, 0  ;;  %p99_p3 = scmp.eq.s32.totalorder %s890_s15, 5 }
   0x6   : > { %s1137_s19 = scalar_select %p39_p0, %s1082_s13, %s41_s18  }
   0x7   : > { %p50_p4 = por %p49_p2, %p48_p1  ;;  %p1139_p5 = por %p99_p3, %p48_p1 }
   0x8   : > { %p893_p6 = scmp.ge.s32.totalorder %s1086_s14, 6 }
   0xa   : > { %127 = sbr.rel (%p893_p6) target bundleno = 44 (0x2c), region = 24 }
   0xf   : > { %130 = sbr.rel (!%p50_p4) target bundleno = 44 (0x2c), region = 28  ;;  %s132_s21 = sand.u32 (%p50_p4), 1, %s1082_s13  }
  0x10   : > { %s954_s22 = smul.u32 (%p50_p4), 24, %s1086_s14 }
  0x11   : > { %s962_s23 = smul.u32 (%p50_p4), 384, %s132_s21 }
  0x12   : > { %s1149_s26 = scalar_lea.vmem (%p50_p4), %s1351_s1, %s954_s22 }
  0x13   : > { %v150_v0 = vld [vmem:[%s1149_s26] sm:$0xff] (%p50_p4)  ;;  %v152_v1 = vld [vmem:[%s1149_s26 + $0x8] sm:$0xff] (%p50_p4)  ;;  %v154_v2 = vld [vmem:[%s1149_s26 + $0x10] sm:$0xff] (%p50_p4)  ;;  %s1154_s27 = scalar_lea.vmem (%p50_p4), [#allocation2], %s962_s23 }
  0x14   : > { %151 = vst [vmem:[%s1154_s27] sm:$0xff] %v150_v0  ;;  %153 = vst [vmem:[%s1154_s27 + $0x8] sm:$0xff] %v152_v1  ;;  %v156_v3 = vld [vmem:[%s1149_s26 + $0x90] sm:$0xff]  ;;  %v158_v4 = vld [vmem:[%s1149_s26 + $0x98] sm:$0xff] }
  0x15   : > { %155 = vst [vmem:[%s1154_s27 + $0x10] sm:$0xff] %v154_v2  ;;  %v160_v5 = vld [vmem:[%s1149_s26 + $0xa0] sm:$0xff]  ;;  %157 = vst [vmem:[%s1154_s27 + $0x18] sm:$0xff] %v156_v3  ;;  %v164_v7 = vld [vmem:[%s1149_s26 + $0x128] sm:$0xff] }
  0x16   : > { %159 = vst [vmem:[%s1154_s27 + $0x20] sm:$0xff] %v158_v4  ;;  %161 = vst [vmem:[%s1154_s27 + $0x28] sm:$0xff] %v160_v5  ;;  %v162_v6 = vld [vmem:[%s1149_s26 + $0x120] sm:$0xff]  ;;  %v166_v8 = vld [vmem:[%s1149_s26 + $0x130] sm:$0xff] }
  0x17   : > { %163 = vst [vmem:[%s1154_s27 + $0x30] sm:$0xff] %v162_v6  ;;  %165 = vst [vmem:[%s1154_s27 + $0x38] sm:$0xff] %v164_v7  ;;  %v168_v9 = vld [vmem:[%s1149_s26 + $0x1b0] sm:$0xff]  ;;  %v170_v10 = vld [vmem:[%s1149_s26 + $0x1b8] sm:$0xff] }
  0x18   : > { %167 = vst [vmem:[%s1154_s27 + $0x40] sm:$0xff] %v166_v8  ;;  %v172_v11 = vld [vmem:[%s1149_s26 + $0x1c0] sm:$0xff]  ;;  %169 = vst [vmem:[%s1154_s27 + $0x48] sm:$0xff] %v168_v9  ;;  %v176_v13 = vld [vmem:[%s1149_s26 + $0x248] sm:$0xff] }
  0x19   : > { %171 = vst [vmem:[%s1154_s27 + $0x50] sm:$0xff] %v170_v10  ;;  %173 = vst [vmem:[%s1154_s27 + $0x58] sm:$0xff] %v172_v11  ;;  %v174_v12 = vld [vmem:[%s1149_s26 + $0x240] sm:$0xff]  ;;  %v178_v14 = vld [vmem:[%s1149_s26 + $0x250] sm:$0xff] }
  0x1a   : > { %175 = vst [vmem:[%s1154_s27 + $0x60] sm:$0xff] %v174_v12  ;;  %177 = vst [vmem:[%s1154_s27 + $0x68] sm:$0xff] %v176_v13  ;;  %v180_v15 = vld [vmem:[%s1149_s26 + $0x2d0] sm:$0xff]  ;;  %v182_v16 = vld [vmem:[%s1149_s26 + $0x2d8] sm:$0xff] }
  0x1b   : > { %179 = vst [vmem:[%s1154_s27 + $0x70] sm:$0xff] %v178_v14  ;;  %v184_v17 = vld [vmem:[%s1149_s26 + $0x2e0] sm:$0xff]  ;;  %181 = vst [vmem:[%s1154_s27 + $0x78] sm:$0xff] %v180_v15  ;;  %v188_v19 = vld [vmem:[%s1149_s26 + $0x368] sm:$0xff] }
  0x1c   : > { %183 = vst [vmem:[%s1154_s27 + $0x80] sm:$0xff] %v182_v16  ;;  %185 = vst [vmem:[%s1154_s27 + $0x88] sm:$0xff] %v184_v17  ;;  %v186_v18 = vld [vmem:[%s1149_s26 + $0x360] sm:$0xff]  ;;  %v190_v20 = vld [vmem:[%s1149_s26 + $0x370] sm:$0xff] }
  0x1d   : > { %187 = vst [vmem:[%s1154_s27 + $0x90] sm:$0xff] %v186_v18  ;;  %189 = vst [vmem:[%s1154_s27 + $0x98] sm:$0xff] %v188_v19  ;;  %v192_v21 = vld [vmem:[%s1149_s26 + $0x3f0] sm:$0xff]  ;;  %v194_v22 = vld [vmem:[%s1149_s26 + $0x3f8] sm:$0xff] }
  0x1e   : > { %191 = vst [vmem:[%s1154_s27 + $0xa0] sm:$0xff] %v190_v20  ;;  %v196_v23 = vld [vmem:[%s1149_s26 + $0x400] sm:$0xff]  ;;  %193 = vst [vmem:[%s1154_s27 + $0xa8] sm:$0xff] %v192_v21  ;;  %v200_v25 = vld [vmem:[%s1149_s26 + $0x488] sm:$0xff] }
  0x1f   : > { %195 = vst [vmem:[%s1154_s27 + $0xb0] sm:$0xff] %v194_v22  ;;  %197 = vst [vmem:[%s1154_s27 + $0xb8] sm:$0xff] %v196_v23  ;;  %v198_v24 = vld [vmem:[%s1149_s26 + $0x480] sm:$0xff]  ;;  %v202_v26 = vld [vmem:[%s1149_s26 + $0x490] sm:$0xff] }
  0x20   : > { %199 = vst [vmem:[%s1154_s27 + $0xc0] sm:$0xff] %v198_v24  ;;  %201 = vst [vmem:[%s1154_s27 + $0xc8] sm:$0xff] %v200_v25  ;;  %v204_v27 = vld [vmem:[%s1149_s26 + $0x510] sm:$0xff]  ;;  %v206_v28 = vld [vmem:[%s1149_s26 + $0x518] sm:$0xff] }
  0x21   : > { %203 = vst [vmem:[%s1154_s27 + $0xd0] sm:$0xff] %v202_v26  ;;  %v208_v29 = vld [vmem:[%s1149_s26 + $0x520] sm:$0xff]  ;;  %205 = vst [vmem:[%s1154_s27 + $0xd8] sm:$0xff] %v204_v27  ;;  %v212_v31 = vld [vmem:[%s1149_s26 + $0x5a8] sm:$0xff] }
  0x22   : > { %207 = vst [vmem:[%s1154_s27 + $0xe0] sm:$0xff] %v206_v28  ;;  %209 = vst [vmem:[%s1154_s27 + $0xe8] sm:$0xff] %v208_v29  ;;  %v210_v30 = vld [vmem:[%s1149_s26 + $0x5a0] sm:$0xff]  ;;  %v214_v32 = vld [vmem:[%s1149_s26 + $0x5b0] sm:$0xff] }
  0x23   : > { %211 = vst [vmem:[%s1154_s27 + $0xf0] sm:$0xff] %v210_v30  ;;  %213 = vst [vmem:[%s1154_s27 + $0xf8] sm:$0xff] %v212_v31  ;;  %v216_v33 = vld [vmem:[%s1149_s26 + $0x630] sm:$0xff]  ;;  %v218_v34 = vld [vmem:[%s1149_s26 + $0x638] sm:$0xff] }
  0x24   : > { %215 = vst [vmem:[%s1154_s27 + $0x100] sm:$0xff] %v214_v32  ;;  %v220_v35 = vld [vmem:[%s1149_s26 + $0x640] sm:$0xff]  ;;  %217 = vst [vmem:[%s1154_s27 + $0x108] sm:$0xff] %v216_v33  ;;  %v224_v37 = vld [vmem:[%s1149_s26 + $0x6c8] sm:$0xff] }
  0x25   : > { %219 = vst [vmem:[%s1154_s27 + $0x110] sm:$0xff] %v218_v34  ;;  %221 = vst [vmem:[%s1154_s27 + $0x118] sm:$0xff] %v220_v35  ;;  %v222_v36 = vld [vmem:[%s1149_s26 + $0x6c0] sm:$0xff]  ;;  %v226_v38 = vld [vmem:[%s1149_s26 + $0x6d0] sm:$0xff] }
  0x26   : > { %223 = vst [vmem:[%s1154_s27 + $0x120] sm:$0xff] %v222_v36  ;;  %225 = vst [vmem:[%s1154_s27 + $0x128] sm:$0xff] %v224_v37  ;;  %v228_v39 = vld [vmem:[%s1149_s26 + $0x750] sm:$0xff]  ;;  %v230_v40 = vld [vmem:[%s1149_s26 + $0x758] sm:$0xff] }
  0x27   : > { %227 = vst [vmem:[%s1154_s27 + $0x130] sm:$0xff] %v226_v38  ;;  %v232_v41 = vld [vmem:[%s1149_s26 + $0x760] sm:$0xff]  ;;  %229 = vst [vmem:[%s1154_s27 + $0x138] sm:$0xff] %v228_v39  ;;  %v236_v43 = vld [vmem:[%s1149_s26 + $0x7e8] sm:$0xff] }
  0x28   : > { %231 = vst [vmem:[%s1154_s27 + $0x140] sm:$0xff] %v230_v40  ;;  %233 = vst [vmem:[%s1154_s27 + $0x148] sm:$0xff] %v232_v41  ;;  %v234_v42 = vld [vmem:[%s1149_s26 + $0x7e0] sm:$0xff]  ;;  %v238_v44 = vld [vmem:[%s1149_s26 + $0x7f0] sm:$0xff] }
  0x29   : > { %235 = vst [vmem:[%s1154_s27 + $0x150] sm:$0xff] %v234_v42  ;;  %237 = vst [vmem:[%s1154_s27 + $0x158] sm:$0xff] %v236_v43  ;;  %v240_v45 = vld [vmem:[%s1149_s26 + $0x870] sm:$0xff]  ;;  %v242_v46 = vld [vmem:[%s1149_s26 + $0x878] sm:$0xff] }
  0x2a   : > { %239 = vst [vmem:[%s1154_s27 + $0x160] sm:$0xff] %v238_v44  ;;  %v244_v47 = vld [vmem:[%s1149_s26 + $0x880] sm:$0xff]  ;;  %241 = vst [vmem:[%s1154_s27 + $0x168] sm:$0xff] %v240_v45 }
  0x2b   : > { %243 = vst [vmem:[%s1154_s27 + $0x170] sm:$0xff] %v242_v46  ;;  %245 = vst [vmem:[%s1154_s27 + $0x178] sm:$0xff] %v244_v47 }
  0x2c PF: > { %p895_p7 = scmp.ge.s32.totalorder %s1086_s14, 1  ;;  %p250_p8 = scmp.lt.s32.totalorder %s1086_s14, 7 }
  0x2e   : > { %p251_p9 = pnand %p895_p7, %p250_p8 }
  0x2f   : > { %s257_s28 = sand.u32 (!%p251_p9), 1, %s1078_s12  }
  0x30   : > { %254 = sbr.rel (%p251_p9) target bundleno = 334 (0x14e), region = 51 }
  0x31   : > { %s963_s29 = smul.u32 (!%p251_p9), 384, %s257_s28 }
  0x32   : > { %s964_s10 = smul.u32 (!%p251_p9), 48, %s257_s28 }
  0x33   : > { %s1263_s7 = scalar_lea.vmem (!%p251_p9), [#allocation2], %s963_s29 }
  0x34   : > { %s1319_s11 = scalar_lea.vmem (!%p251_p9), [#allocation3], %s964_s10 }
  0x35   : > { %v1088_v48 = vmov 0   ;;  %v332_v49 = vld [vmem:[%s1352_s2] sm:$0xff]  ;;  %v333_v50 = vld [vmem:[%s1352_s2 + $0x8] sm:$0xff]  ;;  %v1011_v58 = vld [vmem:[%s1263_s7 + $0x15c] ss:$24 sps:$4 sm:$0xff]   ;;  %s961_s12 = smul.u32 (%p1139_p5), 24, %s890_s15 }
  0x36   : > { %622 = vmatprep.mubr.bf16.mxu0 %v1088_v48  ;;  %665 = vmatprep.mubr.bf16.mxu1 %v1088_v48  ;;  %v991_v51 = vld [vmem:[%s1263_s7 + $0x154] ss:$24 sps:$4 sm:$0xff]   ;;  %v993_v52 = vld [vmem:[%s1263_s7 + $0x150] ss:$24 sps:$4 sm:$0xff]   ;;  %v994_v53 = vld [vmem:[%s1263_s7 + $0x124] ss:$24 sps:$4 sm:$0xff]  }
  0x37   : > { %990 = vset.pattern.permute.xlu0 %v1088_v48  ;;  %590 = vmatprep.subr.bf16.mxu0 %v991_v51  ;;  %v996_v54 = vld [vmem:[%s1263_s7 + $0x120] ss:$24 sps:$4 sm:$0xff]   ;;  %v997_v55 = vld [vmem:[%s1263_s7 + $0xf4] ss:$24 sps:$4 sm:$0xff]   ;;  %v999_v56 = vld [vmem:[%s1263_s7 + $0xf0] ss:$24 sps:$4 sm:$0xff]   ;;  %s806_s20 = scalar_lea.vmem (%p1139_p5), %s1353_s3, %s961_s12 }
  0x38   : > { %336 = vperm.xlu0 %990, %v332_v49   ;;  %591 = vmatpush1.bf16.msra.mxu0 %v993_v52  ;;  %v1000_v57 = vld [vmem:[%s1263_s7 + $0xc4] ss:$24 sps:$4 sm:$0xff]   ;;  %v1014_v59 = vld [vmem:[%s1263_s7 + $0x158] ss:$24 sps:$4 sm:$0xff]   ;;  %v1003_v61 = vld [vmem:[%s1263_s7 + $0x94] ss:$24 sps:$4 sm:$0xff]  }
  0x39   : > { %592 = vmatprep.subr.bf16.mxu0 %v994_v53  ;;  %v1002_v60 = vld [vmem:[%s1263_s7 + $0xc0] ss:$24 sps:$4 sm:$0xff]   ;;  %633 = vmatprep.subr.bf16.mxu1 %v1011_v58  ;;  %v1017_v62 = vld [vmem:[%s1263_s7 + $0x12c] ss:$24 sps:$4 sm:$0xff]   ;;  %v1022_v0 = vld [vmem:[%s1263_s7 + $0xfc] ss:$24 sps:$4 sm:$0xff]  }
  0x3a   : > { %634 = vmatpush1.bf16.msra.mxu1 %v1014_v59  ;;  %v1020_v63 = vld [vmem:[%s1263_s7 + $0x128] ss:$24 sps:$4 sm:$0xff]   ;;  %v1006_v2 = vld [vmem:[%s1263_s7 + $0x64] ss:$24 sps:$4 sm:$0xff]   ;;  %v1027_v3 = vld [vmem:[%s1263_s7 + $0xf8] ss:$24 sps:$4 sm:$0xff]  }
  0x3b   : > { %635 = vmatprep.subr.bf16.mxu1 %v1017_v62  ;;  %v1005_v1 = vld [vmem:[%s1263_s7 + $0x90] ss:$24 sps:$4 sm:$0xff]   ;;  %v1028_v4 = vld [vmem:[%s1263_s7 + $0xcc] ss:$24 sps:$4 sm:$0xff]   ;;  %v1008_v5 = vld [vmem:[%s1263_s7 + $0x60] ss:$24 sps:$4 sm:$0xff]  }
  0x3c   : > { %341 = vperm.xlu0 %990, %v333_v50   ;;  %593 = vmatpush1.bf16.msra.mxu0 %v996_v54  ;;  %v1009_v6 = vld [vmem:[%s1263_s7 + $0x34] ss:$24 sps:$4 sm:$0xff]   ;;  %v1033_v7 = vld [vmem:[%s1263_s7 + $0xc8] ss:$24 sps:$4 sm:$0xff]   ;;  %v1015_v10 = vld [vmem:[%s1263_s7 + $0x4] ss:$24 sps:$4 sm:$0xff]  }
  0x3d   : > { %594 = vmatprep.subr.bf16.mxu0 %v997_v55  ;;  %v1034_v8 = vld [vmem:[%s1263_s7 + $0x9c] ss:$24 sps:$4 sm:$0xff]   ;;  %v1013_v9 = vld [vmem:[%s1263_s7 + $0x30] ss:$24 sps:$4 sm:$0xff]   ;;  %v1040_v12 = vld [vmem:[%s1263_s7 + $0x6c] ss:$24 sps:$4 sm:$0xff]  }
  0x3e   : > { %636 = vmatpush1.bf16.msra.mxu1 %v1020_v63  ;;  %v1039_v11 = vld [vmem:[%s1263_s7 + $0x98] ss:$24 sps:$4 sm:$0xff]   ;;  %v1026_v14 = vld [vmem:[%s1263_s7 + $0x164] ss:$24 sps:$4 sm:$0xff]   ;;  %v1045_v15 = vld [vmem:[%s1263_s7 + $0x68] ss:$24 sps:$4 sm:$0xff]  }
  0x3f   : > { %637 = vmatprep.subr.bf16.mxu1 %v1022_v0  ;;  %v1019_v13 = vld [vmem:[%s1263_s7] ss:$24 sps:$4 sm:$0xff]   ;;  %v1046_v16 = vld [vmem:[%s1263_s7 + $0x3c] ss:$24 sps:$4 sm:$0xff]   ;;  %v1052_v21 = vld [vmem:[%s1263_s7 + $0xc] ss:$24 sps:$4 sm:$0xff]  }
  0x40   : > { %595 = vmatpush1.bf16.msra.mxu0 %v999_v56  ;;  %v1021_v17 = vld [vmem:[%s1350_s0] sm:$0xff]   ;;  %v1032_v19 = vld [vmem:[%s1263_s7 + $0x134] ss:$24 sps:$4 sm:$0xff]   ;;  %v1051_v20 = vld [vmem:[%s1263_s7 + $0x38] ss:$24 sps:$4 sm:$0xff]  }
  0x41   : > { %596 = vmatprep.subr.bf16.mxu0 %v1000_v57  ;;  %v1024_v18 = vld [vmem:[%s1263_s7 + $0x160] ss:$24 sps:$4 sm:$0xff]   ;;  %v1030_v22 = vld [vmem:[%s1263_s7 + $0x130] ss:$24 sps:$4 sm:$0xff]   ;;  %v1038_v23 = vld [vmem:[%s1263_s7 + $0x104] ss:$24 sps:$4 sm:$0xff]  }
  0x42   : > { %638 = vmatpush1.bf16.msra.mxu1 %v1027_v3  ;;  %v1057_v24 = vld [vmem:[%s1263_s7 + $0x8] ss:$24 sps:$4 sm:$0xff]   ;;  %v1044_v26 = vld [vmem:[%s1263_s7 + $0xd4] ss:$24 sps:$4 sm:$0xff]   ;;  %v1050_v28 = vld [vmem:[%s1263_s7 + $0xa4] ss:$24 sps:$4 sm:$0xff]  }
  0x43   : > { %639 = vmatprep.subr.bf16.mxu1 %v1028_v4  ;;  %v1036_v25 = vld [vmem:[%s1263_s7 + $0x100] ss:$24 sps:$4 sm:$0xff]   ;;  %v1042_v27 = vld [vmem:[%s1263_s7 + $0xd0] ss:$24 sps:$4 sm:$0xff]   ;;  %v1056_v30 = vld [vmem:[%s1263_s7 + $0x74] ss:$24 sps:$4 sm:$0xff]  }
  0x44   : > { %597 = vmatpush1.bf16.msra.mxu0 %v1002_v60  ;;  %v1048_v29 = vld [vmem:[%s1263_s7 + $0xa0] ss:$24 sps:$4 sm:$0xff]   ;;  %v1054_v31 = vld [vmem:[%s1263_s7 + $0x70] ss:$24 sps:$4 sm:$0xff]   ;;  %v1060_v32 = vld [vmem:[%s1263_s7 + $0x44] ss:$24 sps:$4 sm:$0xff]  }
  0x45   : > { %598 = vmatprep.subr.bf16.mxu0 %v1003_v61  ;;  %v1058_v33 = vld [vmem:[%s1263_s7 + $0x40] ss:$24 sps:$4 sm:$0xff]   ;;  %v1063_v34 = vld [vmem:[%s1263_s7 + $0x14] ss:$24 sps:$4 sm:$0xff]   ;;  %v1061_v35 = vld [vmem:[%s1263_s7 + $0x10] ss:$24 sps:$4 sm:$0xff]  }
  0x46   : > { %640 = vmatpush1.bf16.msra.mxu1 %v1033_v7 }
  0x47   : > { %641 = vmatprep.subr.bf16.mxu1 %v1034_v8 }
  0x48   : > { %599 = vmatpush1.bf16.msra.mxu0 %v1005_v1 }
  0x49   : > { %600 = vmatprep.subr.bf16.mxu0 %v1006_v2 }
  0x4a   : > { %642 = vmatpush1.bf16.msra.mxu1 %v1039_v11 }
  0x4b   : > { %643 = vmatprep.subr.bf16.mxu1 %v1040_v12 }
  0x4c   : > { %601 = vmatpush1.bf16.msra.mxu0 %v1008_v5 }
  0x4d   : > { %602 = vmatprep.subr.bf16.mxu0 %v1009_v6 }
  0x4e   : > { %644 = vmatpush1.bf16.msra.mxu1 %v1045_v15 }
  0x4f   : > { %645 = vmatprep.subr.bf16.mxu1 %v1046_v16 }
  0x50   : > { %603 = vmatpush1.bf16.msra.mxu0 %v1013_v9 }
  0x51   : > { %604 = vmatprep.subr.bf16.mxu0 %v1015_v10 }
  0x52   : > { %646 = vmatpush1.bf16.msra.mxu1 %v1051_v20 }
  0x53   : > { %647 = vmatprep.subr.bf16.mxu1 %v1052_v21 }
  0x54   : > { %605 = vmatpush1.bf16.msra.mxu0 %v1019_v13 }
  0x55   : > { %676 = vmatprep.subr.bf16.mxu0 %v1026_v14 }
  0x56   : > { %648 = vmatpush1.bf16.msra.mxu1 %v1057_v24 }
  0x57   : > { %623 = vmatmul.mubr.bf16.vlgmr.msra.gmra.mxu0 %v1021_v17 }
  0x58   : > { %677 = vmatpush1.bf16.msra.mxu0 %v1024_v18  ;;  %708 = vmatprep.mubr.bf16.mxu0 %v1088_v48 }
  0x59   : > { %678 = vmatprep.subr.bf16.mxu0 %v1032_v19  ;;  %666 = vmatmul.mubr.bf16.vlgmr.msra.gmra.mxu1 %v1021_v17 }
  0x5c   : > { %679 = vmatpush1.bf16.msra.mxu0 %v1030_v22 }
  0x5d   : > { %680 = vmatprep.subr.bf16.mxu0 %v1038_v23 }
  0x60   : > { %681 = vmatpush1.bf16.msra.mxu0 %v1036_v25 }
  0x61   : > { %682 = vmatprep.subr.bf16.mxu0 %v1044_v26 }
  0x64   : > { %683 = vmatpush1.bf16.msra.mxu0 %v1042_v27 }
  0x65   : > { %684 = vmatprep.subr.bf16.mxu0 %v1050_v28 }
  0x68   : > { %685 = vmatpush1.bf16.msra.mxu0 %v1048_v29 }
  0x69   : > { %686 = vmatprep.subr.bf16.mxu0 %v1056_v30 }
  0x6c   : > { %687 = vmatpush1.bf16.msra.mxu0 %v1054_v31 }
  0x6d   : > { %688 = vmatprep.subr.bf16.mxu0 %v1060_v32 }
  0x70   : > { %689 = vmatpush1.bf16.msra.mxu0 %v1058_v33 }
  0x71   : > { %690 = vmatprep.subr.bf16.mxu0 %v1063_v34 }
  0x74   : > { %691 = vmatpush1.bf16.msra.mxu0 %v1061_v35 }
  0x77   : > { %709 = vmatmul.mubr.bf16.vlgmr.msra.gmra.mxu0 %v1021_v17 }
  0xb3   : > { %v337_v36 = vpop.permute.xlu0 %336 }
  0xb7   : > { %v342_v40 = vpop.permute.xlu0 %341 }
 0x117   : > { %v624_v37 = vpop.f32.mrf.mxu0 }
 0x118   : > { %v625_v38 = vadd.f32 %v624_v37, %v337_v36 }
 0x119   : > { %v626_v39 = vpop.f32.mrf.mxu0  ;;  %v667_v53 = vpop.f32.mrf.mxu1 }
 0x11a   : > { %v731_v41 = vmul.f32 0.2, %v625_v38  ;;  %v627_v42 = vadd.f32 %v626_v39, %v337_v36  ;;  %vm719_vm0 = vcmp.ge.f32.partialorder %v625_v38, 0.0  ;;  %v668_v54 = vadd.f32 %v667_v53, %v337_v36 }
 0x11b   : > { %v628_v43 = vpop.f32.mrf.mxu0  ;;  %v669_v57 = vpop.f32.mrf.mxu1 }
 0x11c   : > { %vm720_vm1 = vcmp.ge.f32.partialorder %v627_v42, 0.0  ;;  %v732_v44 = vmul.f32 0.2, %v627_v42  ;;  %v629_v45 = vadd.f32 %v628_v43, %v342_v40  ;;  %v743_v47 = vsel %vm719_vm0, %v625_v38, %v731_v41 }
 0x11d   : > { %v630_v46 = vpop.f32.mrf.mxu0  ;;  %vm721_vm4 = vcmp.ge.f32.partialorder %v668_v54, 0.0  ;;  %v733_v59 = vmul.f32 0.2, %v668_v54  ;;  %v670_v60 = vadd.f32 %v669_v57, %v337_v36  ;;  %v671_v61 = vpop.f32.mrf.mxu1 }
 0x11e   : > { %v744_v48 = vsel %vm720_vm1, %v627_v42, %v732_v44  ;;  %v737_v49 = vmul.f32 0.2, %v629_v45  ;;  %v631_v50 = vadd.f32 %v630_v46, %v342_v40  ;;  %vm725_vm2 = vcmp.ge.f32.partialorder %v629_v45, 0.0 }
 0x11f   : > { %v955_v51 = vpack.c.bf16 %v744_v48, %v743_v47  ;;  %v745_v62 = vsel %vm721_vm4, %v668_v54, %v733_v59  ;;  %vm722_vm5 = vcmp.ge.f32.partialorder %v670_v60, 0.0  ;;  %v734_v63 = vmul.f32 0.2, %v670_v60  ;;  %v673_v1 = vpop.f32.mrf.mxu1 }
 0x120   : > { %vm726_vm3 = vcmp.ge.f32.partialorder %v631_v50, 0.0  ;;  %v738_v52 = vmul.f32 0.2, %v631_v50  ;;  %v749_v55 = vsel %vm725_vm2, %v629_v45, %v737_v49  ;;  %v672_v0 = vadd.f32 %v671_v61, %v342_v40 }
 0x121   : > { %791 = vst [vmem:[%s1319_s11] sm:$0xff] %v955_v51  ;;  %v746_v2 = vsel %vm722_vm5, %v670_v60, %v734_v63  ;;  %v674_v4 = vadd.f32 %v673_v1, %v342_v40 }
 0x122   : > { %v750_v56 = vsel %vm726_vm3, %v631_v50, %v738_v52  ;;  %vm727_vm6 = vcmp.ge.f32.partialorder %v672_v0, 0.0  ;;  %v739_v3 = vmul.f32 0.2, %v672_v0  ;;  %v956_v5 = vpack.c.bf16 %v746_v2, %v745_v62 }
 0x123   : > { %v958_v58 = vpack.c.bf16 %v750_v56, %v749_v55  ;;  %vm728_vm7 = vcmp.ge.f32.partialorder %v674_v4, 0.0  ;;  %v740_v7 = vmul.f32 0.2, %v674_v4 }
 0x124   : > { %v751_v6 = vsel %vm727_vm6, %v672_v0, %v739_v3  ;;  %792 = vst [vmem:[%s1319_s11 + $0x8] sm:$0xff] %v956_v5 }
 0x125   : > { %794 = vst [vmem:[%s1319_s11 + $0x18] sm:$0xff] %v958_v58  ;;  %v752_v8 = vsel %vm728_vm7, %v674_v4, %v740_v7 }
 0x126   : > { %v959_v9 = vpack.c.bf16 %v752_v8, %v751_v6 }
 0x128   : > { %795 = vst [vmem:[%s1319_s11 + $0x20] sm:$0xff] %v959_v9  ;;  %v819_v28 = vld [vmem:[%s1319_s11] sm:$0xff] (%p1139_p5) }
 0x129   : > { %820 = vst [vmem:[%s806_s20] sm:$0xff] (%p1139_p5), %v819_v28 }
 0x12b   : > { %v821_v29 = vld [vmem:[%s1319_s11 + $0x8] sm:$0xff] (%p1139_p5) }
 0x12c   : > { %v825_v31 = vld [vmem:[%s1319_s11 + $0x18] sm:$0xff] (%p1139_p5)  ;;  %822 = vst [vmem:[%s806_s20 + $0x8] sm:$0xff] (%p1139_p5), %v821_v29 }
 0x12d   : > { %826 = vst [vmem:[%s806_s20 + $0x90] sm:$0xff] (%p1139_p5), %v825_v31 }
 0x12f   : > { %v827_v32 = vld [vmem:[%s1319_s11 + $0x20] sm:$0xff] (%p1139_p5) }
 0x130   : > { %828 = vst [vmem:[%s806_s20 + $0x98] sm:$0xff] (%p1139_p5), %v827_v32 }
 0x137   : > { %v710_v10 = vpop.f32.mrf.mxu0 }
 0x138   : > { %v711_v11 = vadd.f32 %v710_v10, %v337_v36 }
 0x139   : > { %v712_v12 = vpop.f32.mrf.mxu0 }
 0x13a   : > { %v735_v13 = vmul.f32 0.2, %v711_v11  ;;  %v713_v14 = vadd.f32 %v712_v12, %v337_v36  ;;  %vm723_vm8 = vcmp.ge.f32.partialorder %v711_v11, 0.0 }
 0x13b   : > { %v714_v15 = vpop.f32.mrf.mxu0 }
 0x13c   : > { %vm724_vm9 = vcmp.ge.f32.partialorder %v713_v14, 0.0  ;;  %v736_v16 = vmul.f32 0.2, %v713_v14  ;;  %v715_v17 = vadd.f32 %v714_v15, %v342_v40  ;;  %v747_v19 = vsel %vm723_vm8, %v711_v11, %v735_v13 }
 0x13d   : > { %v716_v18 = vpop.f32.mrf.mxu0 }
 0x13e   : > { %v748_v20 = vsel %vm724_vm9, %v713_v14, %v736_v16  ;;  %v741_v21 = vmul.f32 0.2, %v715_v17  ;;  %v717_v22 = vadd.f32 %v716_v18, %v342_v40  ;;  %vm729_vm10 = vcmp.ge.f32.partialorder %v715_v17, 0.0 }
 0x13f   : > { %v957_v23 = vpack.c.bf16 %v748_v20, %v747_v19 }
 0x140   : > { %vm730_vm11 = vcmp.ge.f32.partialorder %v717_v22, 0.0  ;;  %v742_v24 = vmul.f32 0.2, %v717_v22  ;;  %v753_v25 = vsel %vm729_vm10, %v715_v17, %v741_v21 }
 0x141   : > { %793 = vst [vmem:[%s1319_s11 + $0x10] sm:$0xff] %v957_v23  ;;  %803 = sbr.rel (!%p1139_p5) target bundleno = 334 (0x14e), region = 59 }
 0x142   : > { %v754_v26 = vsel %vm730_vm11, %v717_v22, %v742_v24 }
 0x143   : > { %v960_v27 = vpack.c.bf16 %v754_v26, %v753_v25 }
 0x145   : > { %796 = vst [vmem:[%s1319_s11 + $0x28] sm:$0xff] %v960_v27 }
 0x148   : > { %v823_v30 = vld [vmem:[%s1319_s11 + $0x10] sm:$0xff] }
 0x149   : > { %824 = vst [vmem:[%s806_s20 + $0x10] sm:$0xff] %v823_v30 }
 0x14c   : > { %v829_v33 = vld [vmem:[%s1319_s11 + $0x28] sm:$0xff] }
 0x14d   : > { %830 = vst [vmem:[%s806_s20 + $0xa0] sm:$0xff] %v829_v33 }
 0x14e PF: > { %p10_p10 = scmp.ge.s32.totalorder %s1126_s16, 8   ;;  %s1355_s12 = smov %s1082_s13 }
 0x14f   : > { %s1356_s13 = smov %s1137_s19  ;;  %s1357_s14 = smov %s1126_s16 }
 0x150   :  { %12 = sbr.rel (!%p10_p10) target bundleno = 2 (0x2), region = 113 }

// kernel: patchgan_forward.6
= control target key start
LH: loop header
LB: loop body
LE: loop exit
PB: predicated region body
PF: predicated region fallthrough
CT: control target
= control target key end

     0   :  { %s1018_s15 = smov 0   ;;  %s1020_s16 = smov 0   ;;  %s1197_s0 = inlined_call_operand.vmem [shape: bf16[16,128], index: 0, kind: input, shape index: {}]   ;;  %s1198_s1 = inlined_call_operand.vmem [shape: bf16[128,1152], index: 1, kind: input, shape index: {}]   ;;  %s1199_s2 = inlined_call_operand.vmem [shape: bf16[16,1152], index: 2, kind: output, shape index: {0}]   ;;  %s1200_s3 = inlined_call_operand.vmem [shape: f32[3,16,1], index: 3, kind: output, shape index: {1}]   ;;  %s1201_s4 = inlined_call_operand.vmem [shape: f32[3,16,1], index: 4, kind: output, shape index: {2}]  }
   0x1   :  { %s1022_s17 = smov 0  }
   0x2 LB: > { %s1034_s18 = sadd.s32 4294967295, %s988_s17   ;;  %s1037_s19 = sadd.s32 1, %s988_s17   ;;  %s988_s17 = sphi %s1022_s17, %s1205_s17   ;;  %s984_s16 = sphi %s1020_s16, %s1204_s16   ;;  %s980_s15 = sphi %s1018_s15, %s1203_s15  }
   0x3   : > { %s40_s20 = ssub.s32 %s988_s17, %s1037_s19  ;;  %s43_s21 = sadd.s32 1, %s984_s16 }
   0x4   : > { %p41_p0 = scmp.eq.s32.totalorder %s40_s20, 0  ;;  %p50_p1 = scmp.ne.s32.totalorder %s984_s16, %s980_s15 }
   0x5   : > { %p51_p2 = scmp.eq.s32.totalorder %s988_s17, 0  ;;  %p80_p3 = scmp.eq.s32.totalorder %s1034_s18, 2 }
   0x6   : > { %s1047_s22 = scalar_select %p41_p0, %s984_s16, %s43_s21  }
   0x7   : > { %p52_p4 = por %p51_p2, %p50_p1  ;;  %p1049_p5 = por %p80_p3, %p50_p1 }
   0x8   : > { %p791_p6 = scmp.ge.s32.totalorder %s988_s17, 3 }
   0xa   : > { %157 = sbr.rel (%p791_p6) target bundleno = 38 (0x26), region = 20 }
   0xf   : > { %160 = sbr.rel (!%p52_p4) target bundleno = 38 (0x26), region = 24  ;;  %s162_s24 = sand.u32 (%p52_p4), 1, %s984_s16  }
  0x10   : > { %s866_s25 = smul.u32 (%p52_p4), 12, %s988_s17 }
  0x11   : > { %s903_s26 = smul.u32 (%p52_p4), 192, %s162_s24 }
  0x12   : > { %s1059_s29 = scalar_lea.vmem (%p52_p4), %s1198_s1, %s866_s25 }
  0x13   : > { %v182_v0 = vld [vmem:[%s1059_s29] sm:$0xff] (%p52_p4)  ;;  %v186_v2 = vld [vmem:[%s1059_s29 + $0x48] sm:$0xff] (%p52_p4)  ;;  %s1064_s30 = scalar_lea.vmem (%p52_p4), [#allocation2], %s903_s26  ;;  %v190_v4 = vld [vmem:[%s1059_s29 + $0x90] sm:$0xff] (%p52_p4) }
  0x14   : > { %v184_v1 = vld [vmem:[%s1059_s29 + $0x24] sm:$0xff]  ;;  %183 = vst [vmem:[%s1064_s30] sm:$0xff] %v182_v0  ;;  %187 = vst [vmem:[%s1064_s30 + $0x18] sm:$0xff] %v186_v2  ;;  %v188_v3 = vld [vmem:[%s1059_s29 + $0x6c] sm:$0xff] }
  0x15   : > { %185 = vst [vmem:[%s1064_s30 + $0xc] sm:$0xff] %v184_v1  ;;  %v192_v5 = vld [vmem:[%s1059_s29 + $0xb4] sm:$0xff]  ;;  %189 = vst [vmem:[%s1064_s30 + $0x24] sm:$0xff] %v188_v3  ;;  %v196_v7 = vld [vmem:[%s1059_s29 + $0xfc] sm:$0xff] }
  0x16   : > { %191 = vst [vmem:[%s1064_s30 + $0x30] sm:$0xff] %v190_v4  ;;  %193 = vst [vmem:[%s1064_s30 + $0x3c] sm:$0xff] %v192_v5  ;;  %v194_v6 = vld [vmem:[%s1059_s29 + $0xd8] sm:$0xff]  ;;  %v198_v8 = vld [vmem:[%s1059_s29 + $0x120] sm:$0xff] }
  0x17   : > { %195 = vst [vmem:[%s1064_s30 + $0x48] sm:$0xff] %v194_v6  ;;  %197 = vst [vmem:[%s1064_s30 + $0x54] sm:$0xff] %v196_v7  ;;  %v200_v9 = vld [vmem:[%s1059_s29 + $0x144] sm:$0xff]  ;;  %v204_v11 = vld [vmem:[%s1059_s29 + $0x18c] sm:$0xff] }
  0x18   : > { %199 = vst [vmem:[%s1064_s30 + $0x60] sm:$0xff] %v198_v8  ;;  %v202_v10 = vld [vmem:[%s1059_s29 + $0x168] sm:$0xff]  ;;  %201 = vst [vmem:[%s1064_s30 + $0x6c] sm:$0xff] %v200_v9  ;;  %v206_v12 = vld [vmem:[%s1059_s29 + $0x1b0] sm:$0xff] }
  0x19   : > { %203 = vst [vmem:[%s1064_s30 + $0x78] sm:$0xff] %v202_v10  ;;  %205 = vst [vmem:[%s1064_s30 + $0x84] sm:$0xff] %v204_v11  ;;  %v208_v13 = vld [vmem:[%s1059_s29 + $0x1d4] sm:$0xff]  ;;  %v212_v15 = vld [vmem:[%s1059_s29 + $0x21c] sm:$0xff] }
  0x1a   : > { %v210_v14 = vld [vmem:[%s1059_s29 + $0x1f8] sm:$0xff]  ;;  %207 = vst [vmem:[%s1064_s30 + $0x90] sm:$0xff] %v206_v12  ;;  %209 = vst [vmem:[%s1064_s30 + $0x9c] sm:$0xff] %v208_v13  ;;  %v793_v16 = vld [vmem:[%s1059_s29 + $0x8] sm:$0xf] }
  0x1b   : > { %211 = vst [vmem:[%s1064_s30 + $0xa8] sm:$0xff] %v210_v14  ;;  %v795_v17 = vld [vmem:[%s1059_s29 + $0x2c] sm:$0xf]  ;;  %213 = vst [vmem:[%s1064_s30 + $0xb4] sm:$0xff] %v212_v15  ;;  %v797_v18 = vld [vmem:[%s1059_s29 + $0x50] sm:$0xf] }
  0x1c   : > { %794 = vst [vmem:[%s1064_s30 + $0x8] sm:$0xf] %v793_v16  ;;  %796 = vst [vmem:[%s1064_s30 + $0x14] sm:$0xf] %v795_v17  ;;  %v799_v19 = vld [vmem:[%s1059_s29 + $0x74] sm:$0xf] }
  0x1d   : > { %v801_v20 = vld [vmem:[%s1059_s29 + $0x98] sm:$0xf]  ;;  %798 = vst [vmem:[%s1064_s30 + $0x20] sm:$0xf] %v797_v18  ;;  %800 = vst [vmem:[%s1064_s30 + $0x2c] sm:$0xf] %v799_v19 }
  0x1e   : > { %802 = vst [vmem:[%s1064_s30 + $0x38] sm:$0xf] %v801_v20  ;;  %v803_v21 = vld [vmem:[%s1059_s29 + $0xbc] sm:$0xf]  ;;  %v805_v22 = vld [vmem:[%s1059_s29 + $0xe0] sm:$0xf] }
  0x1f   : > { %v807_v23 = vld [vmem:[%s1059_s29 + $0x104] sm:$0xf]  ;;  %804 = vst [vmem:[%s1064_s30 + $0x44] sm:$0xf] %v803_v21  ;;  %806 = vst [vmem:[%s1064_s30 + $0x50] sm:$0xf] %v805_v22 }
  0x20   : > { %808 = vst [vmem:[%s1064_s30 + $0x5c] sm:$0xf] %v807_v23  ;;  %v809_v24 = vld [vmem:[%s1059_s29 + $0x128] sm:$0xf]  ;;  %v811_v25 = vld [vmem:[%s1059_s29 + $0x14c] sm:$0xf] }
  0x21   : > { %v813_v26 = vld [vmem:[%s1059_s29 + $0x170] sm:$0xf]  ;;  %810 = vst [vmem:[%s1064_s30 + $0x68] sm:$0xf] %v809_v24  ;;  %812 = vst [vmem:[%s1064_s30 + $0x74] sm:$0xf] %v811_v25 }
  0x22   : > { %814 = vst [vmem:[%s1064_s30 + $0x80] sm:$0xf] %v813_v26  ;;  %v815_v27 = vld [vmem:[%s1059_s29 + $0x194] sm:$0xf]  ;;  %v817_v28 = vld [vmem:[%s1059_s29 + $0x1b8] sm:$0xf] }
  0x23   : > { %v819_v29 = vld [vmem:[%s1059_s29 + $0x1dc] sm:$0xf]  ;;  %816 = vst [vmem:[%s1064_s30 + $0x8c] sm:$0xf] %v815_v27  ;;  %818 = vst [vmem:[%s1064_s30 + $0x98] sm:$0xf] %v817_v28 }
  0x24   : > { %820 = vst [vmem:[%s1064_s30 + $0xa4] sm:$0xf] %v819_v29  ;;  %v821_v30 = vld [vmem:[%s1059_s29 + $0x200] sm:$0xf]  ;;  %v823_v31 = vld [vmem:[%s1059_s29 + $0x224] sm:$0xf] }
  0x25   : > { %822 = vst [vmem:[%s1064_s30 + $0xb0] sm:$0xf] %v821_v30  ;;  %824 = vst [vmem:[%s1064_s30 + $0xbc] sm:$0xf] %v823_v31 }
  0x26 PF: > { %p825_p7 = scmp.ge.s32.totalorder %s988_s17, 1  ;;  %p258_p8 = scmp.lt.s32.totalorder %s988_s17, 4 }
  0x28   : > { %p259_p9 = pnand %p825_p7, %p258_p8 }
  0x29   : > { %s265_s5 = sand.u32 (!%p259_p9), 1, %s980_s15   ;;  %p301_p10 = scmp.lt.s32.totalorder (!%p259_p9), %s1034_s18, 2 }
  0x2a   : > { %262 = sbr.rel (%p259_p9) target bundleno = 426 (0x1aa), region = 50 }
  0x2b   : > { %s904_s6 = smul.u32 (!%p259_p9), 192, %s265_s5 }
  0x2c   : > { %s905_s10 = smul.u32 (!%p259_p9), 24, %s265_s5 }
  0x2d   : > { %s1132_s7 = scalar_lea.vmem (!%p259_p9), [#allocation2], %s904_s6 }
  0x2e   : > { %s1163_s11 = scalar_lea.vmem (!%p259_p9), [#allocation3], %s905_s10 }
  0x2f   : > { %v990_v32 = vmov 0.0   ;;  %vm991_vm0 = vmmov 0   ;;  %v992_v33 = vmov 0   ;;  %v933_v34 = vld [vmem:[%s1132_s7 + $0xac] ss:$12 sps:$4 sm:$0xff]   ;;  %v965_v58 = vld [vmem:[%s1197_s0] sm:$0xff]  }
  0x30   : > { %883 = vmatprep.subr.bf16.mxu1 %v990_v32  ;;  %899 = vmatprep.mubr.msk.bf16.mxu1 %vm991_vm0, %v990_v32  ;;  %v935_v35 = vld [vmem:[%s1132_s7 + $0xb0] ss:$12 sps:$4 sm:$0xff]   ;;  %v936_v36 = vld [vmem:[%s1132_s7 + $0xa8] ss:$12 sps:$4 sm:$0xff]   ;;  %v939_v38 = vld [vmem:[%s1132_s7 + $0x98] ss:$12 sps:$4 sm:$0xff]  }
  0x31   : > { %512 = vmatprep.mubr.bf16.mxu0 %v992_v33  ;;  %480 = vmatprep.subr.bf16.mxu0 %v933_v34  ;;  %v937_v37 = vld [vmem:[%s1132_s7 + $0x94] ss:$12 sps:$4 sm:$0xff]   ;;  %v940_v39 = vld [vmem:[%s1132_s7 + $0x90] ss:$12 sps:$4 sm:$0xff]   ;;  %v944_v42 = vld [vmem:[%s1132_s7 + $0x78] ss:$12 sps:$4 sm:$0xff]  }
  0x32   : > { %884 = vmatpush3.bf16.msra.mxu1 %v935_v35  ;;  %481 = vmatpush1.bf16.msra.mxu0 %v936_v36  ;;  %v941_v40 = vld [vmem:[%s1132_s7 + $0x7c] ss:$12 sps:$4 sm:$0xff]   ;;  %v943_v41 = vld [vmem:[%s1132_s7 + $0x80] ss:$12 sps:$4 sm:$0xff]   ;;  %v945_v43 = vld [vmem:[%s1132_s7 + $0x64] ss:$12 sps:$4 sm:$0xff]  }
  0x33   : > { %885 = vmatprep.subr.bf16.mxu1 %v990_v32  ;;  %482 = vmatprep.subr.bf16.mxu0 %v937_v37  ;;  %v947_v44 = vld [vmem:[%s1132_s7 + $0x68] ss:$12 sps:$4 sm:$0xff]   ;;  %v948_v45 = vld [vmem:[%s1132_s7 + $0x60] ss:$12 sps:$4 sm:$0xff]   ;;  %v951_v47 = vld [vmem:[%s1132_s7 + $0x50] ss:$12 sps:$4 sm:$0xff]  }
  0x34   : > { %v949_v46 = vld [vmem:[%s1132_s7 + $0x4c] ss:$12 sps:$4 sm:$0xff]   ;;  %v952_v48 = vld [vmem:[%s1132_s7 + $0x48] ss:$12 sps:$4 sm:$0xff]   ;;  %v956_v51 = vld [vmem:[%s1132_s7 + $0x30] ss:$12 sps:$4 sm:$0xff]  }
  0x35   : > { %v953_v49 = vld [vmem:[%s1132_s7 + $0x34] ss:$12 sps:$4 sm:$0xff]   ;;  %v955_v50 = vld [vmem:[%s1132_s7 + $0x38] ss:$12 sps:$4 sm:$0xff]   ;;  %v957_v52 = vld [vmem:[%s1132_s7 + $0x1c] ss:$12 sps:$4 sm:$0xff]  }
  0x36   : > { %886 = vmatpush3.bf16.msra.mxu1 %v939_v38  ;;  %483 = vmatpush1.bf16.msra.mxu0 %v940_v39  ;;  %v959_v53 = vld [vmem:[%s1132_s7 + $0x20] ss:$12 sps:$4 sm:$0xff]   ;;  %v960_v54 = vld [vmem:[%s1132_s7 + $0x18] ss:$12 sps:$4 sm:$0xff]   ;;  %v963_v56 = vld [vmem:[%s1132_s7 + $0x8] ss:$12 sps:$4 sm:$0xff]  }
  0x37   : > { %887 = vmatprep.subr.bf16.mxu1 %v990_v32  ;;  %484 = vmatprep.subr.bf16.mxu0 %v941_v40  ;;  %v961_v55 = vld [vmem:[%s1132_s7 + $0x4] ss:$12 sps:$4 sm:$0xff]   ;;  %v964_v57 = vld [vmem:[%s1132_s7] ss:$12 sps:$4 sm:$0xff]   ;;  %s302_s12 = scalar_select %p301_p10, %s1034_s18, 2  ;;  %vm572_vm1 = vcmask 7168  }
  0x38   : > { %s873_s25 = smul.u32 (%p1049_p5), 12, %s1034_s18 }
  0x39   : > { %s867_s13 = sshll.u32 %s302_s12, 4 }
  0x3a   : > { %888 = vmatpush3.bf16.msra.mxu1 %v943_v41  ;;  %485 = vmatpush1.bf16.msra.mxu0 %v944_v42  ;;  %s305_s17 = scalar_lea.vmem %s1200_s3, %s867_s13  ;;  %s310_s24 = scalar_lea.vmem %s1201_s4, %s867_s13 }
  0x3b   : > { %889 = vmatprep.subr.bf16.mxu1 %v990_v32  ;;  %486 = vmatprep.subr.bf16.mxu0 %v945_v43  ;;  %s634_s28 = scalar_lea.vmem (%p1049_p5), %s1199_s2, %s873_s25 }
  0x3e   : > { %890 = vmatpush3.bf16.msra.mxu1 %v947_v44  ;;  %487 = vmatpush1.bf16.msra.mxu0 %v948_v45 }
  0x3f   : > { %891 = vmatprep.subr.bf16.mxu1 %v990_v32  ;;  %488 = vmatprep.subr.bf16.mxu0 %v949_v46 }
  0x42   : > { %892 = vmatpush3.bf16.msra.mxu1 %v951_v47  ;;  %489 = vmatpush1.bf16.msra.mxu0 %v952_v48 }
  0x43   : > { %893 = vmatprep.subr.bf16.mxu1 %v990_v32  ;;  %490 = vmatprep.subr.bf16.mxu0 %v953_v49 }
  0x46   : > { %894 = vmatpush3.bf16.msra.mxu1 %v955_v50  ;;  %491 = vmatpush1.bf16.msra.mxu0 %v956_v51 }
  0x47   : > { %895 = vmatprep.subr.bf16.mxu1 %v990_v32  ;;  %492 = vmatprep.subr.bf16.mxu0 %v957_v52 }
  0x4a   : > { %896 = vmatpush3.bf16.msra.mxu1 %v959_v53  ;;  %493 = vmatpush1.bf16.msra.mxu0 %v960_v54 }
  0x4b   : > { %897 = vmatprep.subr.bf16.mxu1 %v990_v32  ;;  %494 = vmatprep.subr.bf16.mxu0 %v961_v55 }
  0x4e   : > { %898 = vmatpush3.bf16.msra.mxu1 %v963_v56  ;;  %495 = vmatpush1.bf16.msra.mxu0 %v964_v57 }
  0x51   : > { %900 = vmatmul.mubr.bf16.vlgmr.msra.gmra.mxu1 %v965_v58  ;;  %513 = vmatmul.mubr.bf16.vlgmr.msra.gmra.mxu0 %v965_v58 }
 0x111   : > { %v557_v59 = vpop.f32.mrf.mxu1  ;;  %v514_v61 = vpop.f32.mrf.mxu0 }
 0x112   : > { %v870_v60 = vpack.c.bf16 %v557_v59, %v557_v59  ;;  %v577_v0 = vmul.f32 %v557_v59, %v557_v59  ;;  %v575_v1 = vmul.f32 %v514_v61, %v514_v61 }
 0x113   : > { %v901_v62 = vpop.f32.mrf.mxu1  ;;  %v516_v63 = vpop.f32.mrf.mxu0 }
 0x114   : > { %612 = vst [vmem:[%s1163_s11 + $0x8] sm:$0xf] %v870_v60  ;;  %v576_v2 = vmul.f32 %v516_v63, %v516_v63  ;;  %v869_v3 = vpack.c.bf16 %v516_v63, %v514_v61  ;;  %v564_v5 = vadd.f32 %v516_v63, %v514_v61 }
 0x115   : > { %v560_v4 = vpop.f32.mrf.mxu1  ;;  %v518_v7 = vpop.f32.mrf.mxu0 }
 0x116   : > { %v872_v6 = vpack.c.bf16 %v560_v4, %v560_v4  ;;  %611 = vst [vmem:[%s1163_s11] sm:$0xff] %v869_v3  ;;  %v565_v9 = vadd.f32 %v564_v5, %v557_v59  ;;  %v581_v10 = vadd.f32 %v576_v2, %v575_v1  ;;  %v578_v11 = vmul.f32 %v518_v7, %v518_v7 }
 0x117   : > { %v902_v8 = vpop.f32.mrf.mxu1  ;;  %v520_v12 = vpop.f32.mrf.mxu0  ;;  %v580_v18 = vmul.f32 %v560_v4, %v560_v4 }
 0x118   : > { %614 = vst [vmem:[%s1163_s11 + $0x14] sm:$0xf] %v872_v6  ;;  %v568_v13 = vadd.f32 %v520_v12, %v518_v7  ;;  %v579_v14 = vmul.f32 %v520_v12, %v520_v12  ;;  %v871_v15 = vpack.c.bf16 %v520_v12, %v518_v7  ;;  %566 = vadd.xlane.f32.xlu0 %v565_v9 }
 0x119   : > { %v582_v16 = vadd.f32 %v581_v10, %v577_v0 }
 0x11a   : > { %613 = vst [vmem:[%s1163_s11 + $0xc] sm:$0xff] %v871_v15  ;;  %v569_v17 = vadd.f32 %v568_v13, %v560_v4  ;;  %v585_v19 = vadd.f32 %v579_v14, %v578_v11 }
 0x11b   : > { %583 = vadd.xlane.f32.xlu1 %v582_v16  ;;  %v860_v27 = vld [vmem:[%s1163_s11 + $0x8] sm:$0xf] (%p1049_p5) }
 0x11c   : > { %570 = vadd.xlane.f32.xlu0 %v569_v17  ;;  %v586_v20 = vadd.f32 %v585_v19, %v580_v18  ;;  %861 = vst [vmem:[%s634_s28 + $0x8] sm:$0xf] (%p1049_p5), %v860_v27 }
 0x11d   : > { %v649_v25 = vld [vmem:[%s1163_s11] sm:$0xff] (%p1049_p5) }
 0x11e   : > { %650 = vst [vmem:[%s634_s28] sm:$0xff] (%p1049_p5), %v649_v25 }
 0x11f   : > { %587 = vadd.xlane.f32.xlu1 %v586_v20  ;;  %v862_v28 = vld [vmem:[%s1163_s11 + $0x14] sm:$0xf] (%p1049_p5) }
 0x120   : > { %863 = vst [vmem:[%s634_s28 + $0x2c] sm:$0xf] (%p1049_p5), %v862_v28 }
 0x121   : > { %v651_v26 = vld [vmem:[%s1163_s11 + $0xc] sm:$0xff] (%p1049_p5) }
 0x122   : > { %652 = vst [vmem:[%s634_s28 + $0x24] sm:$0xff] (%p1049_p5), %v651_v26 }
 0x1a1   : > { %v567_v21 = vpop.xlane.xlu0 %566 }
 0x1a2   : > { %573 = vst.msk [vmem:[%s305_s17] sm:$0xff] %vm572_vm1, %v567_v21 }
 0x1a4   : > { %v584_v22 = vpop.xlane.xlu1 %583 }
 0x1a5   : > { %589 = vst.msk [vmem:[%s310_s24] sm:$0xff] %vm572_vm1, %v584_v22  ;;  %v571_v23 = vpop.xlane.xlu0 %570  ;;  %631 = sbr.rel (!%p1049_p5) target bundleno = 426 (0x1aa), region = 58 }
 0x1a6   : > { %574 = vst.msk [vmem:[%s305_s17 + $0x8] sm:$0xff] %vm572_vm1, %v571_v23 }
 0x1a8   : > { %v588_v24 = vpop.xlane.xlu1 %587 }
 0x1a9   : > { %590 = vst.msk [vmem:[%s310_s24 + $0x8] sm:$0xff] %vm572_vm1, %v588_v24 }
 0x1aa PF: > { %p12_p11 = scmp.ge.s32.totalorder %s1037_s19, 5   ;;  %s1203_s15 = smov %s984_s16 }
 0x1ab   : > { %s1204_s16 = smov %s1047_s22  ;;  %s1205_s17 = smov %s1037_s19 }
 0x1ac   :  { %14 = sbr.rel (!%p12_p11) target bundleno = 2 (0x2), region = 151 }

// kernel: patchgan_forward.7
= control target key start
LH: loop header
LB: loop body
LE: loop exit
PB: predicated region body
PF: predicated region fallthrough
CT: control target
= control target key end

     0   :  { %vm477_vm0 = vcmask 7168   ;;  %s977_s1 = inlined_call_operand.vmem [shape: bf16[256,384], index: 1, kind: input, shape index: {}]   ;;  %s978_s0 = inlined_call_operand.vmem [shape: bf16[32,256], index: 0, kind: input, shape index: {}]   ;;  %s979_s2 = inlined_call_operand.vmem [shape: bf16[32,384], index: 2, kind: output, shape index: {0}]   ;;  %s980_s3 = inlined_call_operand.vmem [shape: f32[1,32,1], index: 3, kind: output, shape index: {1}]   ;;  %s981_s4 = inlined_call_operand.vmem [shape: f32[1,32,1], index: 4, kind: output, shape index: {2}]  }
   0x1   :  { %v670_v0 = vld [vmem:[%s977_s1 + $0xac] ss:$12 sps:$4 sm:$0xff]   ;;  %v672_v1 = vld [vmem:[%s977_s1 + $0xa8] ss:$12 sps:$4 sm:$0xff]   ;;  %v675_v3 = vld [vmem:[%s977_s1 + $0x90] ss:$12 sps:$4 sm:$0xff]  }
   0x2   :  { %359 = vmatprep.subr.bf16.mxu0 %v670_v0  ;;  %v673_v2 = vld [vmem:[%s977_s1 + $0x94] ss:$12 sps:$4 sm:$0xff]   ;;  %v676_v4 = vld [vmem:[%s977_s1 + $0x7c] ss:$12 sps:$4 sm:$0xff]   ;;  %v678_v5 = vld [vmem:[%s977_s1 + $0x78] ss:$12 sps:$4 sm:$0xff]  }
   0x3   :  { %360 = vmatpush1.bf16.msra.mxu0 %v672_v1  ;;  %v679_v6 = vld [vmem:[%s977_s1 + $0x64] ss:$12 sps:$4 sm:$0xff]   ;;  %v681_v7 = vld [vmem:[%s977_s1 + $0x60] ss:$12 sps:$4 sm:$0xff]   ;;  %v684_v13 = vld [vmem:[%s977_s1 + $0x48] ss:$12 sps:$4 sm:$0xff]  }
   0x4   :  { %361 = vmatprep.subr.bf16.mxu0 %v673_v2  ;;  %v691_v8 = vld [vmem:[%s977_s1 + $0x170] ss:$12 sps:$4 sm:$0xff]   ;;  %v682_v10 = vld [vmem:[%s977_s1 + $0x4c] ss:$12 sps:$4 sm:$0xff]   ;;  %v685_v14 = vld [vmem:[%s977_s1 + $0x34] ss:$12 sps:$4 sm:$0xff]  }
   0x5   :  { %v692_v9 = vld [vmem:[%s977_s1 + $0xb0] ss:$12 sps:$4 sm:$0xff]   ;;  %642 = vmatprep.subr.bf16.mxu1 %v691_v8  ;;  %v696_v11 = vld [vmem:[%s977_s1 + $0x158] ss:$12 sps:$4 sm:$0xff]   ;;  %v701_v15 = vld [vmem:[%s977_s1 + $0x140] ss:$12 sps:$4 sm:$0xff]  }
   0x6   :  { %643 = vmatpush3.bf16.msra.mxu1 %v692_v9  ;;  %v697_v12 = vld [vmem:[%s977_s1 + $0x98] ss:$12 sps:$4 sm:$0xff]   ;;  %v702_v16 = vld [vmem:[%s977_s1 + $0x80] ss:$12 sps:$4 sm:$0xff]   ;;  %v687_v17 = vld [vmem:[%s977_s1 + $0x30] ss:$12 sps:$4 sm:$0xff]  }
   0x7   :  { %362 = vmatpush1.bf16.msra.mxu0 %v675_v3  ;;  %644 = vmatprep.subr.bf16.mxu1 %v696_v11  ;;  %v688_v18 = vld [vmem:[%s977_s1 + $0x1c] ss:$12 sps:$4 sm:$0xff]   ;;  %v690_v21 = vld [vmem:[%s977_s1 + $0x18] ss:$12 sps:$4 sm:$0xff]   ;;  %v695_v26 = vld [vmem:[%s977_s1] ss:$12 sps:$4 sm:$0xff]  }
   0x8   :  { %363 = vmatprep.subr.bf16.mxu0 %v676_v4  ;;  %v706_v19 = vld [vmem:[%s977_s1 + $0x128] ss:$12 sps:$4 sm:$0xff]   ;;  %v711_v22 = vld [vmem:[%s977_s1 + $0x110] ss:$12 sps:$4 sm:$0xff]   ;;  %v716_v25 = vld [vmem:[%s977_s1 + $0xf8] ss:$12 sps:$4 sm:$0xff]  }
   0x9   :  { %v707_v20 = vld [vmem:[%s977_s1 + $0x68] ss:$12 sps:$4 sm:$0xff]   ;;  %v693_v23 = vld [vmem:[%s977_s1 + $0x4] ss:$12 sps:$4 sm:$0xff]   ;;  %v698_v27 = vld [vmem:[%s977_s1 + $0x16c] ss:$12 sps:$4 sm:$0xff]  }
   0xa   :  { %645 = vmatpush3.bf16.msra.mxu1 %v697_v12  ;;  %v712_v24 = vld [vmem:[%s977_s1 + $0x50] ss:$12 sps:$4 sm:$0xff]   ;;  %v717_v28 = vld [vmem:[%s977_s1 + $0x38] ss:$12 sps:$4 sm:$0xff]   ;;  %v721_v29 = vld [vmem:[%s977_s1 + $0xe0] ss:$12 sps:$4 sm:$0xff]  }
   0xb   :  { %364 = vmatpush1.bf16.msra.mxu0 %v678_v5  ;;  %646 = vmatprep.subr.bf16.mxu1 %v701_v15  ;;  %v700_v30 = vld [vmem:[%s977_s1 + $0x168] ss:$12 sps:$4 sm:$0xff]   ;;  %v722_v32 = vld [vmem:[%s977_s1 + $0x20] ss:$12 sps:$4 sm:$0xff]   ;;  %v705_v34 = vld [vmem:[%s977_s1 + $0x150] ss:$12 sps:$4 sm:$0xff]  }
   0xc   :  { %365 = vmatprep.subr.bf16.mxu0 %v679_v6  ;;  %v703_v31 = vld [vmem:[%s977_s1 + $0x154] ss:$12 sps:$4 sm:$0xff]   ;;  %v708_v35 = vld [vmem:[%s977_s1 + $0x13c] ss:$12 sps:$4 sm:$0xff]   ;;  %v733_v37 = vld [vmem:[%s978_s0 + $0x4] ss:$8 sps:$4 sm:$0xff]  }
   0xd   :  { %v726_v33 = vld [vmem:[%s977_s1 + $0xc8] ss:$12 sps:$4 sm:$0xff]   ;;  %v710_v38 = vld [vmem:[%s977_s1 + $0x138] ss:$12 sps:$4 sm:$0xff]   ;;  %444 = vmatprep.mubr.bf16.mxu1 %v733_v37  ;;  %391 = vmatprep.mubr.bf16.mxu0 %v733_v37  ;;  %v715_v42 = vld [vmem:[%s977_s1 + $0x120] ss:$12 sps:$4 sm:$0xff]  }
   0xe   :  { %647 = vmatpush3.bf16.msra.mxu1 %v702_v16  ;;  %v727_v36 = vld [vmem:[%s977_s1 + $0x8] ss:$12 sps:$4 sm:$0xff]   ;;  %v713_v39 = vld [vmem:[%s977_s1 + $0x124] ss:$12 sps:$4 sm:$0xff]   ;;  %v718_v43 = vld [vmem:[%s977_s1 + $0x10c] ss:$12 sps:$4 sm:$0xff]  }
   0xf   :  { %366 = vmatpush1.bf16.msra.mxu0 %v681_v7  ;;  %648 = vmatprep.subr.bf16.mxu1 %v706_v19  ;;  %v731_v40 = vld [vmem:[%s978_s0] ss:$8 sps:$4 sm:$0xff]   ;;  %v737_v41 = vld [vmem:[%s978_s0 + $0x14] ss:$8 sps:$4 sm:$0xff]   ;;  %v739_v46 = vld [vmem:[%s978_s0 + $0x10] ss:$8 sps:$4 sm:$0xff]  }
  0x10   :  { %367 = vmatprep.subr.bf16.mxu0 %v682_v10  ;;  %v720_v44 = vld [vmem:[%s977_s1 + $0x108] ss:$12 sps:$4 sm:$0xff]   ;;  %v725_v47 = vld [vmem:[%s977_s1 + $0xf0] ss:$12 sps:$4 sm:$0xff]   ;;  %v730_v49 = vld [vmem:[%s977_s1 + $0xd8] ss:$12 sps:$4 sm:$0xff]  }
  0x11   :  { %v723_v45 = vld [vmem:[%s977_s1 + $0xf4] ss:$12 sps:$4 sm:$0xff]   ;;  %v728_v48 = vld [vmem:[%s977_s1 + $0xdc] ss:$12 sps:$4 sm:$0xff]   ;;  %v734_v50 = vld [vmem:[%s977_s1 + $0xc4] ss:$12 sps:$4 sm:$0xff]  }
  0x12   :  { %649 = vmatpush3.bf16.msra.mxu1 %v707_v20  ;;  %v736_v51 = vld [vmem:[%s977_s1 + $0xc0] ss:$12 sps:$4 sm:$0xff]  }
  0x13   :  { %368 = vmatpush1.bf16.msra.mxu0 %v684_v13  ;;  %650 = vmatprep.subr.bf16.mxu1 %v711_v22 }
  0x14   :  { %369 = vmatprep.subr.bf16.mxu0 %v685_v14 }
  0x16   :  { %651 = vmatpush3.bf16.msra.mxu1 %v712_v24 }
  0x17   :  { %370 = vmatpush1.bf16.msra.mxu0 %v687_v17  ;;  %652 = vmatprep.subr.bf16.mxu1 %v716_v25 }
  0x18   :  { %371 = vmatprep.subr.bf16.mxu0 %v688_v18 }
  0x1a   :  { %653 = vmatpush3.bf16.msra.mxu1 %v717_v28 }
  0x1b   :  { %372 = vmatpush1.bf16.msra.mxu0 %v690_v21  ;;  %654 = vmatprep.subr.bf16.mxu1 %v721_v29 }
  0x1c   :  { %373 = vmatprep.subr.bf16.mxu0 %v693_v23 }
  0x1e   :  { %655 = vmatpush3.bf16.msra.mxu1 %v722_v32 }
  0x1f   :  { %374 = vmatpush1.bf16.msra.mxu0 %v695_v26  ;;  %656 = vmatprep.subr.bf16.mxu1 %v726_v33 }
  0x20   :  { %375 = vmatprep.subr.bf16.mxu0 %v698_v27 }
  0x22   :  { %657 = vmatpush3.bf16.msra.mxu1 %v727_v36 }
  0x23   :  { %376 = vmatpush2.bf16.msra.mxu0 %v700_v30 }
  0x24   :  { %377 = vmatprep.subr.bf16.mxu0 %v703_v31 }
  0x25   :  { %445 = vmatmul.mubr.bf16.vlgmr.msra.gmra.mxu1 %v731_v40 }
  0x26   :  { %452 = vmatprep.mubr.bf16.mxu1 %v737_v41 }
  0x27   :  { %378 = vmatpush2.bf16.msra.mxu0 %v705_v34 }
  0x28   :  { %379 = vmatprep.subr.bf16.mxu0 %v708_v35 }
  0x2b   :  { %380 = vmatpush2.bf16.msra.mxu0 %v710_v38 }
  0x2c   :  { %381 = vmatprep.subr.bf16.mxu0 %v713_v39 }
  0x2d   :  { %453 = vmatmul.mubr.bf16.gmra.mxu1 %v739_v46 }
  0x2f   :  { %382 = vmatpush2.bf16.msra.mxu0 %v715_v42 }
  0x30   :  { %383 = vmatprep.subr.bf16.mxu0 %v718_v43 }
  0x33   :  { %384 = vmatpush2.bf16.msra.mxu0 %v720_v44 }
  0x34   :  { %385 = vmatprep.subr.bf16.mxu0 %v723_v45 }
  0x37   :  { %386 = vmatpush2.bf16.msra.mxu0 %v725_v47 }
  0x38   :  { %387 = vmatprep.subr.bf16.mxu0 %v728_v48 }
  0x3b   :  { %388 = vmatpush2.bf16.msra.mxu0 %v730_v49 }
  0x3c   :  { %389 = vmatprep.subr.bf16.mxu0 %v734_v50 }
  0x3f   :  { %390 = vmatpush2.bf16.msra.mxu0 %v736_v51 }
  0x42   :  { %392 = vmatmul.mubr.bf16.vlgmr.msra.gmra.mxu0 %v731_v40 }
  0x43   :  { %401 = vmatprep.mubr.bf16.mxu0 %v737_v41 }
  0x4a   :  { %402 = vmatmul.mubr.bf16.gmra.mxu0 %v739_v46 }
  0xe5   :  { %v658_v52 = vpop.f32.mrf.mxu1 }
  0xe7   :  { %v659_v53 = vpop.f32.mrf.mxu1 }
  0xe8   :  { %v660_v54 = vadd.f32 %v659_v53, %v658_v52 }
  0xe9   :  { %v661_v55 = vpop.f32.mrf.mxu1 }
  0xea   :  { %v635_v56 = vpack.c.bf16 %v660_v54, %v660_v54  ;;  %v484_v17 = vmul.f32 %v660_v54, %v660_v54 }
  0xeb   :  { %v662_v57 = vpop.f32.mrf.mxu1 }
  0xec   :  { %555 = vst [vmem:[%s979_s2 + $0x8] sm:$0xf] %v635_v56  ;;  %v663_v58 = vadd.f32 %v662_v57, %v661_v55 }
  0xed   :  { %v664_v59 = vpop.f32.mrf.mxu1 }
  0xee   :  { %v637_v60 = vpack.c.bf16 %v663_v58, %v663_v58  ;;  %v487_v19 = vmul.f32 %v663_v58, %v663_v58 }
  0xef   :  { %v665_v61 = vpop.f32.mrf.mxu1 }
  0xf0   :  { %557 = vst [vmem:[%s979_s2 + $0x14] sm:$0xf] %v637_v60  ;;  %v666_v62 = vadd.f32 %v665_v61, %v664_v59 }
  0xf1   :  { %v667_v63 = vpop.f32.mrf.mxu1 }
  0xf2   :  { %v639_v0 = vpack.c.bf16 %v666_v62, %v666_v62  ;;  %v490_v31 = vmul.f32 %v666_v62, %v666_v62 }
  0xf3   :  { %v668_v1 = vpop.f32.mrf.mxu1 }
  0xf4   :  { %559 = vst [vmem:[%s979_s2 + $0x20] sm:$0xf] %v639_v0  ;;  %v669_v2 = vadd.f32 %v668_v1, %v667_v63 }
  0xf6   :  { %v641_v3 = vpack.c.bf16 %v669_v2, %v669_v2  ;;  %v493_v42 = vmul.f32 %v669_v2, %v669_v2 }
  0xf8   :  { %561 = vst [vmem:[%s979_s2 + $0x2c] sm:$0xf] %v641_v3 }
 0x102   :  { %v393_v4 = vpop.f32.mrf.mxu0 }
 0x103   :  { %v482_v6 = vmul.f32 %v393_v4, %v393_v4 }
 0x104   :  { %v395_v5 = vpop.f32.mrf.mxu0 }
 0x105   :  { %v483_v7 = vmul.f32 %v395_v5, %v395_v5  ;;  %v634_v8 = vpack.c.bf16 %v395_v5, %v393_v4  ;;  %v461_v9 = vadd.f32 %v395_v5, %v393_v4 }
 0x106   :  { %v397_v10 = vpop.f32.mrf.mxu0 }
 0x107   :  { %554 = vst [vmem:[%s979_s2] sm:$0xff] %v634_v8  ;;  %v462_v11 = vadd.f32 %v660_v54, %v461_v9  ;;  %v494_v12 = vadd.f32 %v483_v7, %v482_v6  ;;  %v485_v14 = vmul.f32 %v397_v10, %v397_v10 }
 0x108   :  { %v399_v13 = vpop.f32.mrf.mxu0 }
 0x109   :  { %v486_v15 = vmul.f32 %v399_v13, %v399_v13  ;;  %v636_v16 = vpack.c.bf16 %v399_v13, %v397_v10  ;;  %463 = vadd.xlane.f32.xlu0 %v462_v11  ;;  %v495_v21 = vadd.f32 %v494_v12, %v484_v17  ;;  %v465_v23 = vadd.f32 %v399_v13, %v397_v10 }
 0x10a   :  { %v403_v18 = vpop.f32.mrf.mxu0 }
 0x10b   :  { %556 = vst [vmem:[%s979_s2 + $0xc] sm:$0xff] %v636_v16  ;;  %v488_v20 = vmul.f32 %v403_v18, %v403_v18  ;;  %v498_v22 = vadd.f32 %v486_v15, %v485_v14  ;;  %v466_v30 = vadd.f32 %v663_v58, %v465_v23 }
 0x10c   :  { %v405_v24 = vpop.f32.mrf.mxu0 }
 0x10d   :  { %v489_v25 = vmul.f32 %v405_v24, %v405_v24  ;;  %v638_v26 = vpack.c.bf16 %v405_v24, %v403_v18  ;;  %496 = vadd.xlane.f32.xlu0 %v495_v21  ;;  %v499_v27 = vadd.f32 %v498_v22, %v487_v19  ;;  %v469_v28 = vadd.f32 %v405_v24, %v403_v18 }
 0x10e   :  { %v407_v29 = vpop.f32.mrf.mxu0 }
 0x10f   :  { %558 = vst [vmem:[%s979_s2 + $0x18] sm:$0xff] %v638_v26  ;;  %500 = vadd.xlane.f32.xlu1 %v499_v27  ;;  %v502_v32 = vadd.f32 %v489_v25, %v488_v20  ;;  %v470_v37 = vadd.f32 %v666_v62, %v469_v28  ;;  %v491_v38 = vmul.f32 %v407_v29, %v407_v29 }
 0x110   :  { %v409_v33 = vpop.f32.mrf.mxu0 }
 0x111   :  { %v473_v34 = vadd.f32 %v409_v33, %v407_v29  ;;  %v492_v35 = vmul.f32 %v409_v33, %v409_v33  ;;  %v640_v36 = vpack.c.bf16 %v409_v33, %v407_v29  ;;  %467 = vadd.xlane.f32.xlu0 %v466_v30  ;;  %v503_v39 = vadd.f32 %v502_v32, %v490_v31 }
 0x113   :  { %560 = vst [vmem:[%s979_s2 + $0x24] sm:$0xff] %v640_v36  ;;  %471 = vadd.xlane.f32.xlu1 %v470_v37  ;;  %v474_v40 = vadd.f32 %v669_v2, %v473_v34  ;;  %v506_v41 = vadd.f32 %v492_v35, %v491_v38 }
 0x115   :  { %504 = vadd.xlane.f32.xlu0 %v503_v39  ;;  %v507_v43 = vadd.f32 %v506_v41, %v493_v42 }
 0x117   :  { %475 = vadd.xlane.f32.xlu1 %v474_v40 }
 0x11b   :  { %508 = vadd.xlane.f32.xlu1 %v507_v43 }
 0x192   :  { %v464_v44 = vpop.xlane.xlu0 %463 }
 0x193   :  { %478 = vst.msk [vmem:[%s980_s3] sm:$0xff] %vm477_vm0, %v464_v44 }
 0x196   :  { %v497_v45 = vpop.xlane.xlu0 %496 }
 0x197   :  { %510 = vst.msk [vmem:[%s981_s4] sm:$0xff] %vm477_vm0, %v497_v45 }
 0x198   :  { %v501_v46 = vpop.xlane.xlu1 %500 }
 0x199   :  { %511 = vst.msk [vmem:[%s981_s4 + $0x8] sm:$0xff] %vm477_vm0, %v501_v46 }
 0x19a   :  { %v468_v47 = vpop.xlane.xlu0 %467 }
 0x19b   :  { %479 = vst.msk [vmem:[%s980_s3 + $0x8] sm:$0xff] %vm477_vm0, %v468_v47 }
 0x19c   :  { %v472_v48 = vpop.xlane.xlu1 %471 }
 0x19d   :  { %480 = vst.msk [vmem:[%s980_s3 + $0x10] sm:$0xff] %vm477_vm0, %v472_v48 }
 0x19e   :  { %v505_v49 = vpop.xlane.xlu0 %504 }
 0x19f   :  { %512 = vst.msk [vmem:[%s981_s4 + $0x10] sm:$0xff] %vm477_vm0, %v505_v49 }
 0x1a0   :  { %v476_v50 = vpop.xlane.xlu1 %475 }
 0x1a1   :  { %481 = vst.msk [vmem:[%s980_s3 + $0x18] sm:$0xff] %vm477_vm0, %v476_v50 }
 0x1a4   :  { %v509_v51 = vpop.xlane.xlu1 %508 }
 0x1a5   :  { %513 = vst.msk [vmem:[%s981_s4 + $0x18] sm:$0xff] %vm477_vm0, %v509_v51 }

// kernel: patchgan_forward.8
= control target key start
LH: loop header
LB: loop body
LE: loop exit
PB: predicated region body
PF: predicated region fallthrough
CT: control target
= control target key end

     0   :  { %vm513_vm0 = vcmask 7168   ;;  %s1074_s1 = inlined_call_operand.vmem [shape: bf16[512,128], index: 1, kind: input, shape index: {}]   ;;  %s1075_s0 = inlined_call_operand.vmem [shape: bf16[64,512], index: 0, kind: input, shape index: {}]   ;;  %s1076_s2 = inlined_call_operand.vmem [shape: bf16[64,128], index: 2, kind: output, shape index: {0}]   ;;  %s1077_s3 = inlined_call_operand.vmem [shape: f32[1,64,1], index: 3, kind: output, shape index: {1}]   ;;  %s1078_s4 = inlined_call_operand.vmem [shape: f32[1,64,1], index: 4, kind: output, shape index: {2}]  }
   0x1   :  { %v773_v0 = vld [vmem:[%s1074_s1 + $0x78] sm:$0xff]   ;;  %v777_v4 = vld [vmem:[%s1074_s1 + $0x70] sm:$0xff]   ;;  %v781_v8 = vld [vmem:[%s1074_s1 + $0x68] sm:$0xff]  }
   0x2   :  { %v774_v1 = vld [vmem:[%s1074_s1 + $0xf8] sm:$0xff]   ;;  %693 = vmatprep.subr.bf16.mxu0 %v773_v0  ;;  %v778_v5 = vld [vmem:[%s1074_s1 + $0xf0] sm:$0xff]   ;;  %v782_v9 = vld [vmem:[%s1074_s1 + $0xe8] sm:$0xff]  }
   0x3   :  { %v775_v2 = vld [vmem:[%s1074_s1 + $0x38] sm:$0xff]   ;;  %733 = vmatprep.subr.bf16.mxu1 %v774_v1  ;;  %v779_v6 = vld [vmem:[%s1074_s1 + $0x30] sm:$0xff]   ;;  %v783_v10 = vld [vmem:[%s1074_s1 + $0x28] sm:$0xff]  }
   0x4   :  { %v776_v3 = vld [vmem:[%s1074_s1 + $0xb8] sm:$0xff]   ;;  %694 = vmatpush3.bf16.msra.mxu0 %v775_v2  ;;  %v780_v7 = vld [vmem:[%s1074_s1 + $0xb0] sm:$0xff]   ;;  %v784_v11 = vld [vmem:[%s1074_s1 + $0xa8] sm:$0xff]  }
   0x5   :  { %734 = vmatpush3.bf16.msra.mxu1 %v776_v3  ;;  %695 = vmatprep.subr.bf16.mxu0 %v777_v4  ;;  %v785_v12 = vld [vmem:[%s1074_s1 + $0x60] sm:$0xff]   ;;  %v789_v16 = vld [vmem:[%s1074_s1 + $0x58] sm:$0xff]   ;;  %v793_v20 = vld [vmem:[%s1074_s1 + $0x50] sm:$0xff]  }
   0x6   :  { %735 = vmatprep.subr.bf16.mxu1 %v778_v5  ;;  %v786_v13 = vld [vmem:[%s1074_s1 + $0xe0] sm:$0xff]   ;;  %v790_v17 = vld [vmem:[%s1074_s1 + $0xd8] sm:$0xff]   ;;  %v794_v21 = vld [vmem:[%s1074_s1 + $0xd0] sm:$0xff]  }
   0x7   :  { %v787_v14 = vld [vmem:[%s1074_s1 + $0x20] sm:$0xff]   ;;  %v791_v18 = vld [vmem:[%s1074_s1 + $0x18] sm:$0xff]   ;;  %v795_v22 = vld [vmem:[%s1074_s1 + $0x10] sm:$0xff]  }
   0x8   :  { %696 = vmatpush3.bf16.msra.mxu0 %v779_v6  ;;  %v788_v15 = vld [vmem:[%s1074_s1 + $0xa0] sm:$0xff]   ;;  %v792_v19 = vld [vmem:[%s1074_s1 + $0x98] sm:$0xff]   ;;  %v796_v23 = vld [vmem:[%s1074_s1 + $0x90] sm:$0xff]  }
   0x9   :  { %736 = vmatpush3.bf16.msra.mxu1 %v780_v7  ;;  %697 = vmatprep.subr.bf16.mxu0 %v781_v8  ;;  %v797_v24 = vld [vmem:[%s1074_s1 + $0x48] sm:$0xff]   ;;  %v801_v28 = vld [vmem:[%s1074_s1 + $0x40] sm:$0xff]  }
   0xa   :  { %737 = vmatprep.subr.bf16.mxu1 %v782_v9  ;;  %v798_v25 = vld [vmem:[%s1074_s1 + $0xc8] sm:$0xff]   ;;  %v802_v29 = vld [vmem:[%s1074_s1 + $0xc0] sm:$0xff]  }
   0xb   :  { %v799_v26 = vld [vmem:[%s1074_s1 + $0x8] sm:$0xff]   ;;  %v803_v30 = vld [vmem:[%s1074_s1] sm:$0xff]  }
   0xc   :  { %698 = vmatpush3.bf16.msra.mxu0 %v783_v10  ;;  %v800_v27 = vld [vmem:[%s1074_s1 + $0x88] sm:$0xff]   ;;  %v804_v31 = vld [vmem:[%s1074_s1 + $0x80] sm:$0xff]  }
   0xd   :  { %738 = vmatpush3.bf16.msra.mxu1 %v784_v11  ;;  %699 = vmatprep.subr.bf16.mxu0 %v785_v12  ;;  %v805_v32 = vld [vmem:[%s1075_s0] ss:$16 sps:$4 sm:$0xff]   ;;  %v807_v33 = vld [vmem:[%s1075_s0 + $0x4] ss:$16 sps:$4 sm:$0xff]   ;;  %v808_v34 = vld [vmem:[%s1075_s0 + $0x8] ss:$16 sps:$4 sm:$0xff]  }
   0xe   :  { %739 = vmatprep.subr.bf16.mxu1 %v786_v13  ;;  %v810_v35 = vld [vmem:[%s1075_s0 + $0xc] ss:$16 sps:$4 sm:$0xff]   ;;  %399 = vmatprep.mubr.bf16.mxu0 %v807_v33  ;;  %v811_v36 = vld [vmem:[%s1075_s0 + $0x24] ss:$16 sps:$4 sm:$0xff]   ;;  %v815_v38 = vld [vmem:[%s1075_s0 + $0x20] ss:$16 sps:$4 sm:$0xff]  }
   0xf   :  { %464 = vmatprep.mubr.bf16.mxu1 %v810_v35  ;;  %v813_v37 = vld [vmem:[%s1075_s0 + $0x2c] ss:$16 sps:$4 sm:$0xff]   ;;  %v816_v39 = vld [vmem:[%s1075_s0 + $0x28] ss:$16 sps:$4 sm:$0xff]   ;;  %v817_v40 = vld [vmem:[%s1075_s0 + $0x44] ss:$16 sps:$4 sm:$0xff]  }
  0x10   :  { %700 = vmatpush3.bf16.msra.mxu0 %v787_v14  ;;  %v819_v41 = vld [vmem:[%s1075_s0 + $0x4c] ss:$16 sps:$4 sm:$0xff]   ;;  %v821_v42 = vld [vmem:[%s1075_s0 + $0x40] ss:$16 sps:$4 sm:$0xff]   ;;  %v822_v43 = vld [vmem:[%s1075_s0 + $0x48] ss:$16 sps:$4 sm:$0xff]  }
  0x11   :  { %740 = vmatpush3.bf16.msra.mxu1 %v788_v15  ;;  %701 = vmatprep.subr.bf16.mxu0 %v789_v16  ;;  %v823_v44 = vld [vmem:[%s1075_s0 + $0x64] ss:$16 sps:$4 sm:$0xff]   ;;  %v825_v45 = vld [vmem:[%s1075_s0 + $0x6c] ss:$16 sps:$4 sm:$0xff]   ;;  %v827_v46 = vld [vmem:[%s1075_s0 + $0x60] ss:$16 sps:$4 sm:$0xff]  }
  0x12   :  { %741 = vmatprep.subr.bf16.mxu1 %v790_v17  ;;  %v828_v47 = vld [vmem:[%s1075_s0 + $0x68] ss:$16 sps:$4 sm:$0xff]  }
  0x14   :  { %702 = vmatpush3.bf16.msra.mxu0 %v791_v18 }
  0x15   :  { %742 = vmatpush3.bf16.msra.mxu1 %v792_v19  ;;  %703 = vmatprep.subr.bf16.mxu0 %v793_v20 }
  0x16   :  { %743 = vmatprep.subr.bf16.mxu1 %v794_v21 }
  0x18   :  { %704 = vmatpush3.bf16.msra.mxu0 %v795_v22 }
  0x19   :  { %744 = vmatpush3.bf16.msra.mxu1 %v796_v23  ;;  %705 = vmatprep.subr.bf16.mxu0 %v797_v24 }
  0x1a   :  { %745 = vmatprep.subr.bf16.mxu1 %v798_v25 }
  0x1c   :  { %706 = vmatpush3.bf16.msra.mxu0 %v799_v26 }
  0x1d   :  { %746 = vmatpush3.bf16.msra.mxu1 %v800_v27  ;;  %707 = vmatprep.subr.bf16.mxu0 %v801_v28 }
  0x1e   :  { %747 = vmatprep.subr.bf16.mxu1 %v802_v29 }
  0x20   :  { %708 = vmatpush3.bf16.msra.mxu0 %v803_v30 }
  0x21   :  { %748 = vmatpush3.bf16.msra.mxu1 %v804_v31 }
  0x23   :  { %400 = vmatmul.mubr.bf16.vlgmr.msra.gmra.mxu0 %v805_v32 }
  0x24   :  { %465 = vmatmul.mubr.bf16.vlgmr.msra.gmra.mxu1 %v808_v34  ;;  %407 = vmatprep.mubr.bf16.mxu0 %v811_v36 }
  0x25   :  { %472 = vmatprep.mubr.bf16.mxu1 %v813_v37 }
  0x2b   :  { %408 = vmatmul.mubr.bf16.gmra.mxu0 %v815_v38 }
  0x2c   :  { %473 = vmatmul.mubr.bf16.gmra.mxu1 %v816_v39  ;;  %415 = vmatprep.mubr.bf16.mxu0 %v817_v40 }
  0x2d   :  { %480 = vmatprep.mubr.bf16.mxu1 %v819_v41 }
  0x33   :  { %416 = vmatmul.mubr.bf16.gmra.mxu0 %v821_v42 }
  0x34   :  { %481 = vmatmul.mubr.bf16.gmra.mxu1 %v822_v43  ;;  %423 = vmatprep.mubr.bf16.mxu0 %v823_v44 }
  0x35   :  { %488 = vmatprep.mubr.bf16.mxu1 %v825_v45 }
  0x3b   :  { %424 = vmatmul.mubr.bf16.gmra.mxu0 %v827_v46 }
  0x3c   :  { %489 = vmatmul.mubr.bf16.gmra.mxu1 %v828_v47 }
  0xe3   :  { %v709_v48 = vpop.f32.mrf.mxu0 }
  0xe4   :  { %v749_v49 = vpop.f32.mrf.mxu1 }
  0xe5   :  { %v710_v50 = vpop.f32.mrf.mxu0 }
  0xe6   :  { %v711_v51 = vadd.f32 %v710_v50, %v709_v48  ;;  %v750_v52 = vpop.f32.mrf.mxu1 }
  0xe7   :  { %v751_v53 = vadd.f32 %v750_v52, %v749_v49  ;;  %v712_v54 = vpop.f32.mrf.mxu0 }
  0xe8   :  { %v752_v55 = vpop.f32.mrf.mxu1 }
  0xe9   :  { %v467_v56 = vadd.f32 %v751_v53, %v711_v51  ;;  %v713_v57 = vpop.f32.mrf.mxu0 }
  0xea   :  { %v714_v58 = vadd.f32 %v713_v57, %v712_v54  ;;  %v753_v59 = vpop.f32.mrf.mxu1 }
  0xeb   :  { %v754_v60 = vadd.f32 %v753_v59, %v752_v55  ;;  %497 = vadd.xlane.f32.xlu0 %v467_v56  ;;  %v715_v61 = vpop.f32.mrf.mxu0  ;;  %v522_v1 = vmul.f32 %v467_v56, %v467_v56 }
  0xec   :  { %v755_v62 = vpop.f32.mrf.mxu1 }
  0xed   :  { %v470_v63 = vadd.f32 %v754_v60, %v714_v58  ;;  %v716_v0 = vpop.f32.mrf.mxu0 }
  0xee   :  { %v717_v2 = vadd.f32 %v716_v0, %v715_v61  ;;  %v756_v3 = vpop.f32.mrf.mxu1 }
  0xef   :  { %v673_v4 = vpack.c.bf16 %v470_v63, %v467_v56  ;;  %v757_v5 = vadd.f32 %v756_v3, %v755_v62  ;;  %530 = vadd.xlane.f32.xlu0 %v522_v1  ;;  %v718_v6 = vpop.f32.mrf.mxu0  ;;  %v523_v7 = vmul.f32 %v470_v63, %v470_v63 }
  0xf0   :  { %v758_v8 = vpop.f32.mrf.mxu1 }
  0xf1   :  { %674 = vst [vmem:[%s1076_s2] sm:$0xff] %v673_v4   ;;  %v475_v9 = vadd.f32 %v757_v5, %v717_v2  ;;  %532 = vadd.xlane.f32.xlu1 %v523_v7  ;;  %v719_v10 = vpop.f32.mrf.mxu0 }
  0xf2   :  { %v720_v11 = vadd.f32 %v719_v10, %v718_v6  ;;  %v759_v12 = vpop.f32.mrf.mxu1 }
  0xf3   :  { %v760_v13 = vadd.f32 %v759_v12, %v758_v8  ;;  %499 = vadd.xlane.f32.xlu0 %v470_v63  ;;  %v721_v14 = vpop.f32.mrf.mxu0  ;;  %v524_v18 = vmul.f32 %v475_v9, %v475_v9 }
  0xf4   :  { %v761_v15 = vpop.f32.mrf.mxu1 }
  0xf5   :  { %v478_v16 = vadd.f32 %v760_v13, %v720_v11  ;;  %501 = vadd.xlane.f32.xlu1 %v475_v9  ;;  %v722_v17 = vpop.f32.mrf.mxu0 }
  0xf6   :  { %v723_v19 = vadd.f32 %v722_v17, %v721_v14  ;;  %v762_v20 = vpop.f32.mrf.mxu1 }
  0xf7   :  { %v678_v21 = vpack.c.bf16 %v478_v16, %v475_v9  ;;  %v763_v22 = vadd.f32 %v762_v20, %v761_v15  ;;  %534 = vadd.xlane.f32.xlu0 %v524_v18  ;;  %v724_v23 = vpop.f32.mrf.mxu0  ;;  %v525_v31 = vmul.f32 %v478_v16, %v478_v16 }
  0xf8   :  { %v764_v24 = vpop.f32.mrf.mxu1 }
  0xf9   :  { %690 = vst [vmem:[%s1076_s2 + $0x8] sm:$0xff] %v678_v21   ;;  %v483_v25 = vadd.f32 %v763_v22, %v723_v19  ;;  %503 = vadd.xlane.f32.xlu1 %v478_v16  ;;  %v725_v26 = vpop.f32.mrf.mxu0 }
  0xfa   :  { %v726_v27 = vadd.f32 %v725_v26, %v724_v23  ;;  %v765_v28 = vpop.f32.mrf.mxu1 }
  0xfb   :  { %v766_v29 = vadd.f32 %v765_v28, %v764_v24  ;;  %505 = vadd.xlane.f32.xlu0 %v483_v25  ;;  %v727_v30 = vpop.f32.mrf.mxu0  ;;  %v526_v35 = vmul.f32 %v483_v25, %v483_v25 }
  0xfc   :  { %v767_v32 = vpop.f32.mrf.mxu1 }
  0xfd   :  { %v486_v33 = vadd.f32 %v766_v29, %v726_v27  ;;  %536 = vadd.xlane.f32.xlu1 %v525_v31  ;;  %v728_v34 = vpop.f32.mrf.mxu0 }
  0xfe   :  { %v729_v36 = vadd.f32 %v728_v34, %v727_v30  ;;  %v768_v37 = vpop.f32.mrf.mxu1 }
  0xff   :  { %v683_v38 = vpack.c.bf16 %v486_v33, %v483_v25  ;;  %v769_v39 = vadd.f32 %v768_v37, %v767_v32  ;;  %538 = vadd.xlane.f32.xlu0 %v526_v35  ;;  %v730_v40 = vpop.f32.mrf.mxu0  ;;  %v527_v47 = vmul.f32 %v486_v33, %v486_v33 }
 0x100   :  { %v770_v41 = vpop.f32.mrf.mxu1 }
 0x101   :  { %691 = vst [vmem:[%s1076_s2 + $0x10] sm:$0xff] %v683_v38   ;;  %v491_v42 = vadd.f32 %v769_v39, %v729_v36  ;;  %507 = vadd.xlane.f32.xlu1 %v486_v33  ;;  %v731_v43 = vpop.f32.mrf.mxu0 }
 0x102   :  { %v732_v44 = vadd.f32 %v731_v43, %v730_v40  ;;  %v771_v45 = vpop.f32.mrf.mxu1 }
 0x103   :  { %v772_v46 = vadd.f32 %v771_v45, %v770_v41  ;;  %509 = vadd.xlane.f32.xlu0 %v491_v42  ;;  %v528_v49 = vmul.f32 %v491_v42, %v491_v42 }
 0x105   :  { %v494_v48 = vadd.f32 %v772_v46, %v732_v44  ;;  %540 = vadd.xlane.f32.xlu1 %v527_v47 }
 0x107   :  { %v688_v50 = vpack.c.bf16 %v494_v48, %v491_v42  ;;  %542 = vadd.xlane.f32.xlu0 %v528_v49  ;;  %v529_v51 = vmul.f32 %v494_v48, %v494_v48 }
 0x109   :  { %692 = vst [vmem:[%s1076_s2 + $0x18] sm:$0xff] %v688_v50   ;;  %511 = vadd.xlane.f32.xlu1 %v494_v48 }
 0x10d   :  { %544 = vadd.xlane.f32.xlu1 %v529_v51 }
 0x174   :  { %v498_v52 = vpop.xlane.xlu0 %497 }
 0x175   :  { %514 = vst.msk [vmem:[%s1077_s3] sm:$0xff] %vm513_vm0, %v498_v52 }
 0x178   :  { %v531_v53 = vpop.xlane.xlu0 %530 }
 0x179   :  { %546 = vst.msk [vmem:[%s1078_s4] sm:$0xff] %vm513_vm0, %v531_v53 }
 0x17a   :  { %v533_v54 = vpop.xlane.xlu1 %532 }
 0x17b   :  { %547 = vst.msk [vmem:[%s1078_s4 + $0x8] sm:$0xff] %vm513_vm0, %v533_v54 }
 0x17c   :  { %v500_v55 = vpop.xlane.xlu0 %499 }
 0x17d   :  { %515 = vst.msk [vmem:[%s1077_s3 + $0x8] sm:$0xff] %vm513_vm0, %v500_v55 }
 0x17e   :  { %v502_v56 = vpop.xlane.xlu1 %501 }
 0x17f   :  { %516 = vst.msk [vmem:[%s1077_s3 + $0x10] sm:$0xff] %vm513_vm0, %v502_v56 }
 0x180   :  { %v535_v57 = vpop.xlane.xlu0 %534 }
 0x181   :  { %548 = vst.msk [vmem:[%s1078_s4 + $0x10] sm:$0xff] %vm513_vm0, %v535_v57 }
 0x182   :  { %v504_v58 = vpop.xlane.xlu1 %503 }
 0x183   :  { %517 = vst.msk [vmem:[%s1077_s3 + $0x18] sm:$0xff] %vm513_vm0, %v504_v58 }
 0x184   :  { %v506_v59 = vpop.xlane.xlu0 %505 }
 0x185   :  { %518 = vst.msk [vmem:[%s1077_s3 + $0x20] sm:$0xff] %vm513_vm0, %v506_v59 }
 0x186   :  { %v537_v60 = vpop.xlane.xlu1 %536 }
 0x187   :  { %549 = vst.msk [vmem:[%s1078_s4 + $0x18] sm:$0xff] %vm513_vm0, %v537_v60 }
 0x188   :  { %v539_v61 = vpop.xlane.xlu0 %538 }
 0x189   :  { %550 = vst.msk [vmem:[%s1078_s4 + $0x20] sm:$0xff] %vm513_vm0, %v539_v61 }
 0x18a   :  { %v508_v62 = vpop.xlane.xlu1 %507 }
 0x18b   :  { %519 = vst.msk [vmem:[%s1077_s3 + $0x28] sm:$0xff] %vm513_vm0, %v508_v62 }
 0x18c   :  { %v510_v63 = vpop.xlane.xlu0 %509 }
 0x18d   :  { %520 = vst.msk [vmem:[%s1077_s3 + $0x30] sm:$0xff] %vm513_vm0, %v510_v63 }
 0x18e   :  { %v541_v0 = vpop.xlane.xlu1 %540 }
 0x18f   :  { %551 = vst.msk [vmem:[%s1078_s4 + $0x28] sm:$0xff] %vm513_vm0, %v541_v0 }
 0x190   :  { %v543_v1 = vpop.xlane.xlu0 %542 }
 0x191   :  { %552 = vst.msk [vmem:[%s1078_s4 + $0x30] sm:$0xff] %vm513_vm0, %v543_v1 }
 0x192   :  { %v512_v2 = vpop.xlane.xlu1 %511 }
 0x193   :  { %521 = vst.msk [vmem:[%s1077_s3 + $0x38] sm:$0xff] %vm513_vm0, %v512_v2 }
 0x196   :  { %v545_v3 = vpop.xlane.xlu1 %544 }
 0x197   :  { %553 = vst.msk [vmem:[%s1078_s4 + $0x38] sm:$0xff] %vm513_vm0, %v545_v3 }

// kernel: patchgan_forward.9
= control target key start
LH: loop header
LB: loop body
LE: loop exit
PB: predicated region body
PF: predicated region fallthrough
CT: control target
= control target key end

     0   :  { %v983_v1 = vmov 0   ;;  %s1232_s1 = inlined_call_operand.vmem [shape: bf16[1024,128], index: 1, kind: input, shape index: {}]   ;;  %s1233_s0 = inlined_call_operand.vmem [shape: bf16[16,1024], index: 0, kind: input, shape index: {}]   ;;  %s1234_s2 = inlined_call_operand.vmem [shape: f32[16,1], index: 2, kind: input, shape index: {}]   ;;  %s1235_s3 = inlined_call_operand.vmem [shape: f32[16,128], index: 3, kind: output, shape index: {}]  }
   0x1   :  { %v919_v0 = vld [vmem:[%s1232_s1 + $0x78] sm:$0xff]   ;;  %918 = vset.pattern.permute.xlu0 %v983_v1  ;;  %v923_v5 = vld [vmem:[%s1232_s1 + $0x70] sm:$0xff]   ;;  %v927_v9 = vld [vmem:[%s1232_s1 + $0x68] sm:$0xff]  }
   0x2   :  { %v920_v2 = vld [vmem:[%s1232_s1 + $0xf8] sm:$0xff]   ;;  %829 = vmatprep.subr.bf16.mxu0 %v919_v0  ;;  %v924_v6 = vld [vmem:[%s1232_s1 + $0xf0] sm:$0xff]   ;;  %v928_v10 = vld [vmem:[%s1232_s1 + $0xe8] sm:$0xff]  }
   0x3   :  { %v921_v3 = vld [vmem:[%s1232_s1 + $0x38] sm:$0xff]   ;;  %851 = vmatprep.subr.bf16.mxu1 %v920_v2  ;;  %v925_v7 = vld [vmem:[%s1232_s1 + $0x30] sm:$0xff]   ;;  %v929_v11 = vld [vmem:[%s1232_s1 + $0x28] sm:$0xff]  }
   0x4   :  { %v922_v4 = vld [vmem:[%s1232_s1 + $0xb8] sm:$0xff]   ;;  %830 = vmatpush3.bf16.msra.mxu0 %v921_v3  ;;  %v926_v8 = vld [vmem:[%s1232_s1 + $0xb0] sm:$0xff]   ;;  %v930_v12 = vld [vmem:[%s1232_s1 + $0xa8] sm:$0xff]  }
   0x5   :  { %852 = vmatpush3.bf16.msra.mxu1 %v922_v4  ;;  %831 = vmatprep.subr.bf16.mxu0 %v923_v5  ;;  %v931_v13 = vld [vmem:[%s1232_s1 + $0x60] sm:$0xff]   ;;  %v935_v17 = vld [vmem:[%s1232_s1 + $0x58] sm:$0xff]   ;;  %v939_v21 = vld [vmem:[%s1232_s1 + $0x50] sm:$0xff]  }
   0x6   :  { %853 = vmatprep.subr.bf16.mxu1 %v924_v6  ;;  %v932_v14 = vld [vmem:[%s1232_s1 + $0xe0] sm:$0xff]   ;;  %v936_v18 = vld [vmem:[%s1232_s1 + $0xd8] sm:$0xff]   ;;  %v940_v22 = vld [vmem:[%s1232_s1 + $0xd0] sm:$0xff]  }
   0x7   :  { %v933_v15 = vld [vmem:[%s1232_s1 + $0x20] sm:$0xff]   ;;  %v937_v19 = vld [vmem:[%s1232_s1 + $0x18] sm:$0xff]   ;;  %v941_v23 = vld [vmem:[%s1232_s1 + $0x10] sm:$0xff]  }
   0x8   :  { %832 = vmatpush3.bf16.msra.mxu0 %v925_v7  ;;  %v934_v16 = vld [vmem:[%s1232_s1 + $0xa0] sm:$0xff]   ;;  %v938_v20 = vld [vmem:[%s1232_s1 + $0x98] sm:$0xff]   ;;  %v942_v24 = vld [vmem:[%s1232_s1 + $0x90] sm:$0xff]  }
   0x9   :  { %854 = vmatpush3.bf16.msra.mxu1 %v926_v8  ;;  %833 = vmatprep.subr.bf16.mxu0 %v927_v9  ;;  %v943_v25 = vld [vmem:[%s1232_s1 + $0x48] sm:$0xff]   ;;  %v947_v29 = vld [vmem:[%s1232_s1 + $0x40] sm:$0xff]   ;;  %v951_v41 = vld [vmem:[%s1232_s1 + $0x178] sm:$0xff]  }
   0xa   :  { %855 = vmatprep.subr.bf16.mxu1 %v928_v10  ;;  %v944_v26 = vld [vmem:[%s1232_s1 + $0xc8] sm:$0xff]   ;;  %v948_v30 = vld [vmem:[%s1232_s1 + $0xc0] sm:$0xff]   ;;  %v952_v42 = vld [vmem:[%s1232_s1 + $0x1f8] sm:$0xff]  }
   0xb   :  { %v945_v27 = vld [vmem:[%s1232_s1 + $0x8] sm:$0xff]   ;;  %v949_v31 = vld [vmem:[%s1232_s1] sm:$0xff]   ;;  %v953_v43 = vld [vmem:[%s1232_s1 + $0x138] sm:$0xff]  }
   0xc   :  { %834 = vmatpush3.bf16.msra.mxu0 %v929_v11  ;;  %v946_v28 = vld [vmem:[%s1232_s1 + $0x88] sm:$0xff]   ;;  %v950_v32 = vld [vmem:[%s1232_s1 + $0x80] sm:$0xff]   ;;  %v954_v44 = vld [vmem:[%s1232_s1 + $0x1b8] sm:$0xff]  }
   0xd   :  { %856 = vmatpush3.bf16.msra.mxu1 %v930_v12  ;;  %835 = vmatprep.subr.bf16.mxu0 %v931_v13  ;;  %v15_v33 = vld [vmem:[%s1233_s0] sm:$0xff]  ;;  %v16_v35 = vld [vmem:[%s1233_s0 + $0x8] sm:$0xff]  ;;  %v955_v45 = vld [vmem:[%s1232_s1 + $0x170] sm:$0xff]  }
   0xe   :  { %857 = vmatprep.subr.bf16.mxu1 %v932_v14  ;;  %v19_v34 = vld [vmem:[%s1233_s0 + $0x20] sm:$0xff]  ;;  %v20_v38 = vld [vmem:[%s1233_s0 + $0x28] sm:$0xff]  ;;  %v956_v46 = vld [vmem:[%s1232_s1 + $0x1f0] sm:$0xff]  }
   0xf   :  { %v757_v36 = vcombine.low %v15_v33, %v19_v34  ;;  %v758_v37 = vcombine.high %v15_v33, %v19_v34  ;;  %v759_v39 = vcombine.low %v16_v35, %v20_v38  ;;  %v760_v40 = vcombine.high %v16_v35, %v20_v38  ;;  %v957_v47 = vld [vmem:[%s1232_s1 + $0x130] sm:$0xff]   ;;  %v959_v49 = vld [vmem:[%s1232_s1 + $0x168] sm:$0xff]   ;;  %v963_v53 = vld [vmem:[%s1232_s1 + $0x160] sm:$0xff]  }
  0x10   :  { %836 = vmatpush3.bf16.msra.mxu0 %v933_v15  ;;  %v958_v48 = vld [vmem:[%s1232_s1 + $0x1b0] sm:$0xff]   ;;  %v960_v50 = vld [vmem:[%s1232_s1 + $0x1e8] sm:$0xff]   ;;  %v964_v54 = vld [vmem:[%s1232_s1 + $0x1e0] sm:$0xff]  }
  0x11   :  { %858 = vmatpush3.bf16.msra.mxu1 %v934_v16  ;;  %837 = vmatprep.subr.bf16.mxu0 %v935_v17  ;;  %v961_v51 = vld [vmem:[%s1232_s1 + $0x128] sm:$0xff]   ;;  %v965_v55 = vld [vmem:[%s1232_s1 + $0x120] sm:$0xff]   ;;  %v967_v57 = vld [vmem:[%s1232_s1 + $0x158] sm:$0xff]  }
  0x12   :  { %859 = vmatprep.subr.bf16.mxu1 %v936_v18  ;;  %619 = vmatprep.mubr.bf16.mxu0 %v758_v37  ;;  %v962_v52 = vld [vmem:[%s1232_s1 + $0x1a8] sm:$0xff]   ;;  %v966_v56 = vld [vmem:[%s1232_s1 + $0x1a0] sm:$0xff]   ;;  %v968_v58 = vld [vmem:[%s1232_s1 + $0x1d8] sm:$0xff]  }
  0x13   :  { %660 = vmatprep.mubr.bf16.mxu1 %v760_v40  ;;  %v969_v59 = vld [vmem:[%s1232_s1 + $0x118] sm:$0xff]   ;;  %v971_v61 = vld [vmem:[%s1232_s1 + $0x150] sm:$0xff]   ;;  %v975_v1 = vld [vmem:[%s1232_s1 + $0x148] sm:$0xff]  }
  0x14   :  { %838 = vmatpush3.bf16.msra.mxu0 %v937_v19  ;;  %v970_v60 = vld [vmem:[%s1232_s1 + $0x198] sm:$0xff]   ;;  %v972_v62 = vld [vmem:[%s1232_s1 + $0x1d0] sm:$0xff]   ;;  %v976_v2 = vld [vmem:[%s1232_s1 + $0x1c8] sm:$0xff]  }
  0x15   :  { %860 = vmatpush3.bf16.msra.mxu1 %v938_v20  ;;  %839 = vmatprep.subr.bf16.mxu0 %v939_v21  ;;  %v973_v63 = vld [vmem:[%s1232_s1 + $0x110] sm:$0xff]   ;;  %v977_v3 = vld [vmem:[%s1232_s1 + $0x108] sm:$0xff]   ;;  %v979_v5 = vld [vmem:[%s1232_s1 + $0x140] sm:$0xff]  }
  0x16   :  { %861 = vmatprep.subr.bf16.mxu1 %v940_v22  ;;  %v974_v0 = vld [vmem:[%s1232_s1 + $0x190] sm:$0xff]   ;;  %v978_v4 = vld [vmem:[%s1232_s1 + $0x188] sm:$0xff]   ;;  %v980_v6 = vld [vmem:[%s1232_s1 + $0x1c0] sm:$0xff]  }
  0x17   :  { %v981_v7 = vld [vmem:[%s1232_s1 + $0x100] sm:$0xff]   ;;  %v17_v9 = vld [vmem:[%s1233_s0 + $0x10] sm:$0xff]  ;;  %v18_v13 = vld [vmem:[%s1233_s0 + $0x18] sm:$0xff] }
  0x18   :  { %840 = vmatpush3.bf16.msra.mxu0 %v941_v23  ;;  %v982_v8 = vld [vmem:[%s1232_s1 + $0x180] sm:$0xff]   ;;  %v21_v10 = vld [vmem:[%s1233_s0 + $0x30] sm:$0xff]  ;;  %v22_v14 = vld [vmem:[%s1233_s0 + $0x38] sm:$0xff] }
  0x19   :  { %862 = vmatpush3.bf16.msra.mxu1 %v942_v24  ;;  %841 = vmatprep.subr.bf16.mxu0 %v943_v25  ;;  %v761_v11 = vcombine.low %v17_v9, %v21_v10  ;;  %v762_v12 = vcombine.high %v17_v9, %v21_v10  ;;  %v151_v15 = vld [vmem:[%s1234_s2] sm:$0xff]  ;;  %v763_v16 = vcombine.low %v18_v13, %v22_v14  ;;  %v152_v18 = vld [vmem:[%s1234_s2 + $0x8] sm:$0xff] }
  0x1a   :  { %863 = vmatprep.subr.bf16.mxu1 %v944_v26  ;;  %v764_v17 = vcombine.high %v18_v13, %v22_v14  ;;  %155 = vperm.xlu0 %918, %v151_v15  }
  0x1c   :  { %842 = vmatpush3.bf16.msra.mxu0 %v945_v27 }
  0x1d   :  { %864 = vmatpush3.bf16.msra.mxu1 %v946_v28  ;;  %843 = vmatprep.subr.bf16.mxu0 %v947_v29 }
  0x1e   :  { %865 = vmatprep.subr.bf16.mxu1 %v948_v30  ;;  %160 = vperm.xlu0 %918, %v152_v18  }
  0x20   :  { %844 = vmatpush3.bf16.msra.mxu0 %v949_v31 }
  0x21   :  { %866 = vmatpush3.bf16.msra.mxu1 %v950_v32  ;;  %873 = vmatprep.subr.bf16.mxu0 %v951_v41 }
  0x22   :  { %895 = vmatprep.subr.bf16.mxu1 %v952_v42 }
  0x23   :  { %620 = vmatmul.mubr.bf16.vlgmr.msra.gmra.mxu0 %v757_v36 }
  0x24   :  { %661 = vmatmul.mubr.bf16.vlgmr.msra.gmra.mxu1 %v759_v39  ;;  %874 = vmatpush3.bf16.msra.mxu0 %v953_v43 }
  0x25   :  { %896 = vmatpush3.bf16.msra.mxu1 %v954_v44  ;;  %875 = vmatprep.subr.bf16.mxu0 %v955_v45 }
  0x26   :  { %897 = vmatprep.subr.bf16.mxu1 %v956_v46  ;;  %701 = vmatprep.mubr.bf16.mxu0 %v762_v12 }
  0x27   :  { %742 = vmatprep.mubr.bf16.mxu1 %v764_v17 }
  0x28   :  { %876 = vmatpush3.bf16.msra.mxu0 %v957_v47 }
  0x29   :  { %898 = vmatpush3.bf16.msra.mxu1 %v958_v48  ;;  %877 = vmatprep.subr.bf16.mxu0 %v959_v49 }
  0x2a   :  { %899 = vmatprep.subr.bf16.mxu1 %v960_v50 }
  0x2c   :  { %878 = vmatpush3.bf16.msra.mxu0 %v961_v51 }
  0x2d   :  { %900 = vmatpush3.bf16.msra.mxu1 %v962_v52  ;;  %879 = vmatprep.subr.bf16.mxu0 %v963_v53 }
  0x2e   :  { %901 = vmatprep.subr.bf16.mxu1 %v964_v54 }
  0x30   :  { %880 = vmatpush3.bf16.msra.mxu0 %v965_v55 }
  0x31   :  { %902 = vmatpush3.bf16.msra.mxu1 %v966_v56  ;;  %881 = vmatprep.subr.bf16.mxu0 %v967_v57 }
  0x32   :  { %903 = vmatprep.subr.bf16.mxu1 %v968_v58 }
  0x34   :  { %882 = vmatpush3.bf16.msra.mxu0 %v969_v59 }
  0x35   :  { %904 = vmatpush3.bf16.msra.mxu1 %v970_v60  ;;  %883 = vmatprep.subr.bf16.mxu0 %v971_v61 }
  0x36   :  { %905 = vmatprep.subr.bf16.mxu1 %v972_v62 }
  0x38   :  { %884 = vmatpush3.bf16.msra.mxu0 %v973_v63 }
  0x39   :  { %906 = vmatpush3.bf16.msra.mxu1 %v974_v0  ;;  %885 = vmatprep.subr.bf16.mxu0 %v975_v1 }
  0x3a   :  { %907 = vmatprep.subr.bf16.mxu1 %v976_v2 }
  0x3c   :  { %886 = vmatpush3.bf16.msra.mxu0 %v977_v3 }
  0x3d   :  { %908 = vmatpush3.bf16.msra.mxu1 %v978_v4  ;;  %887 = vmatprep.subr.bf16.mxu0 %v979_v5 }
  0x3e   :  { %909 = vmatprep.subr.bf16.mxu1 %v980_v6 }
  0x40   :  { %888 = vmatpush3.bf16.msra.mxu0 %v981_v7 }
  0x41   :  { %910 = vmatpush3.bf16.msra.mxu1 %v982_v8 }
  0x43   :  { %702 = vmatmul.mubr.bf16.vlgmr.msra.gmra.mxu0 %v761_v11 }
  0x44   :  { %743 = vmatmul.mubr.bf16.vlgmr.msra.gmra.mxu1 %v763_v16 }
  0x95   :  { %v156_v24 = vpop.permute.xlu0 %155 }
  0x99   :  { %v161_v32 = vpop.permute.xlu0 %160 }
  0xe3   :  { %v845_v19 = vpop.f32.mrf.mxu0 }
  0xe4   :  { %v867_v20 = vpop.f32.mrf.mxu1 }
  0xe5   :  { %v846_v21 = vpop.f32.mrf.mxu0 }
  0xe6   :  { %v868_v22 = vpop.f32.mrf.mxu1  ;;  %v847_v25 = vadd.f32 %v846_v21, %v845_v19 }
  0xe7   :  { %v848_v23 = vpop.f32.mrf.mxu0  ;;  %v869_v28 = vadd.f32 %v868_v22, %v867_v20 }
  0xe8   :  { %v870_v26 = vpop.f32.mrf.mxu1  ;;  %v622_v29 = vadd.f32 %v847_v25, %v156_v24 }
  0xe9   :  { %v849_v27 = vpop.f32.mrf.mxu0 }
  0xea   :  { %v850_v30 = vadd.f32 %v849_v27, %v848_v23  ;;  %v871_v31 = vpop.f32.mrf.mxu1  ;;  %v663_v36 = vadd.f32 %v869_v28, %v622_v29 }
  0xeb   :  { %v872_v41 = vadd.f32 %v871_v31, %v870_v26 }
  0xec   :  { %v625_v37 = vadd.f32 %v850_v30, %v161_v32 }
  0xee   :  { %v666_v46 = vadd.f32 %v872_v41, %v625_v37 }
 0x103   :  { %v889_v33 = vpop.f32.mrf.mxu0 }
 0x104   :  { %v911_v34 = vpop.f32.mrf.mxu1 }
 0x105   :  { %v890_v35 = vpop.f32.mrf.mxu0 }
 0x106   :  { %v891_v38 = vadd.f32 %v890_v35, %v889_v33  ;;  %v912_v39 = vpop.f32.mrf.mxu1 }
 0x107   :  { %v892_v40 = vpop.f32.mrf.mxu0  ;;  %v913_v43 = vadd.f32 %v912_v39, %v911_v34 }
 0x108   :  { %v704_v42 = vadd.f32 %v891_v38, %v663_v36  ;;  %v914_v44 = vpop.f32.mrf.mxu1 }
 0x109   :  { %v893_v45 = vpop.f32.mrf.mxu0 }
 0x10a   :  { %v745_v47 = vadd.f32 %v913_v43, %v704_v42  ;;  %v894_v48 = vadd.f32 %v893_v45, %v892_v40  ;;  %v915_v49 = vpop.f32.mrf.mxu1 }
 0x10b   :  { %v916_v51 = vadd.f32 %v915_v49, %v914_v44 }
 0x10c   :  { %751 = vst [vmem:[%s1235_s3] sm:$0xff] %v745_v47  ;;  %v707_v50 = vadd.f32 %v894_v48, %v666_v46 }
 0x10e   :  { %v748_v52 = vadd.f32 %v916_v51, %v707_v50 }
 0x110   :  { %752 = vst [vmem:[%s1235_s3 + $0x8] sm:$0xff] %v748_v52 }

</bundles_post_ra>
